<compile_context>
chip_gen: v7x
topology: tpu7x:2x2x1
jax: 0.10.0
libtpu: 0.0.40
codegen_flags: <defaults>
</compile_context>

<pallas_src>
import jax
import jax.numpy as jnp
from jax.experimental import pallas as pl
from jax.experimental.pallas import tpu as pltpu


def _round_up(x, m):
    return ((x + m - 1) // m) * m


def mlp_kernel(x_ref, w1_ref, b1_ref, w2_ref, b2_ref, w3_ref, b3_ref,
               o_ref, h1_acc):
    """Grid = (M blocks, K blocks). K is the layer-1 reduction axis."""
    k = pl.program_id(1)

    @pl.when(k == 0)
    def _():
        h1_acc[...] = jnp.zeros_like(h1_acc)

    # Layer 1 partial product: (bm, tk) @ (tk, 512) on the MXU (bf16 inputs,
    # f32 accumulation).  x is cast in VMEM — no extra HBM traffic.
    xb = x_ref[...].astype(w1_ref.dtype)
    h1_acc[...] += jnp.dot(xb, w1_ref[...], preferred_element_type=jnp.float32)

    # Layers 2 & 3 (tiny) + store only once the K reduction is complete.
    @pl.when(k == pl.num_programs(1) - 1)
    def _():
        h1 = jnp.maximum(h1_acc[...] + b1_ref[...], 0.0)
        h2 = jnp.dot(h1, w2_ref[...], preferred_element_type=jnp.float32)
        h2 = jnp.maximum(h2 + b2_ref[...], 0.0)
        out = jnp.dot(h2, w3_ref[...], preferred_element_type=jnp.float32)
        o_ref[...] = (out + b3_ref[...]).astype(o_ref.dtype)


def prepare_params(params, w1_dtype=jnp.bfloat16):
    """One-time conversion of PyTorch-convention params to kernel layout.

    Weights (out, in) -> (in, out); w1's K dim zero-padded to a multiple of
    128; w1 cast to a narrow dtype (bf16) since it dominates HBM traffic.
    Do this at load time — NOT per forward call.
    """
    w1, b1 = params["w1"], params["b1"]
    w2, b2 = params["w2"], params["b2"]
    w3, b3 = params["w3"], params["b3"]
    k_in = w1.shape[1]
    k_pad = _round_up(k_in, 128)
    w1t = jnp.pad(w1.T.astype(w1_dtype), ((0, k_pad - k_in), (0, 0)))
    return {
        "w1t": w1t,
        "b1": b1[None, :].astype(jnp.float32),
        "w2t": w2.T.astype(jnp.float32),
        "b2": b2[None, :].astype(jnp.float32),
        "w3t": w3.T.astype(jnp.float32),
        "b3": b3[None, :].astype(jnp.float32),
    }


def mlp_forward(x, prepared, *, tk=1024, bm_max=256):
    """x: (B, 4000) float32.  prepared: output of prepare_params()."""
    w1t = prepared["w1t"]
    b1, w2t, b2 = prepared["b1"], prepared["w2t"], prepared["b2"]
    w3t, b3 = prepared["w3t"], prepared["b3"]

    B, k_in = x.shape
    k_pad, h1_dim = w1t.shape
    h2_dim = w2t.shape[1]
    n_out = w3t.shape[1]

    # K tile: multiple of 128 that divides the padded K (4096 -> 1024).
    tk = min(tk, k_pad)
    while k_pad % tk:
        tk -= 128
    # M tile: whole (sublane-aligned) batch if small, else bm_max-row tiles.
    bm = _round_up(B, 8) if B <= bm_max else bm_max
    b_pad = _round_up(B, bm)

    # Zero-pad x (tiny vs. the weight read); padded rows/cols contribute 0.
    x_p = x
    if (b_pad, k_pad) != (B, k_in):
        x_p = jnp.pad(x, ((0, b_pad - B), (0, k_pad - k_in)))

    grid = (b_pad // bm, k_pad // tk)

    out = pl.pallas_call(
        mlp_kernel,
        out_shape=jax.ShapeDtypeStruct((b_pad, n_out), jnp.float32),
        grid_spec=pltpu.PrefetchScalarGridSpec(
            num_scalar_prefetch=0,
            grid=grid,
            in_specs=[
                pl.BlockSpec((bm, tk), lambda i, k: (i, k)),          # x
                pl.BlockSpec((tk, h1_dim), lambda i, k: (k, 0)),      # w1
                pl.BlockSpec((1, h1_dim), lambda i, k: (0, 0)),       # b1
                pl.BlockSpec((h1_dim, h2_dim), lambda i, k: (0, 0)),  # w2
                pl.BlockSpec((1, h2_dim), lambda i, k: (0, 0)),       # b2
                pl.BlockSpec((h2_dim, n_out), lambda i, k: (0, 0)),   # w3
                pl.BlockSpec((1, n_out), lambda i, k: (0, 0)),        # b3
            ],
            out_specs=pl.BlockSpec((bm, n_out), lambda i, k: (i, 0)),
            scratch_shapes=[pltpu.VMEM((bm, h1_dim), jnp.float32)],
        ),
        compiler_params=pltpu.CompilerParams(
            dimension_semantics=("parallel", "arbitrary")),
    )(x_p, w1t, b1, w2t, b2, w3t, b3)

    return out[:B] if b_pad != B else out


def init_params(key):
    """Deterministic init matching nn.Linear shapes (weight: (out, in))."""
    dims = [(512, 4000), (64, 512), (2, 64)]
    params = {}
    for i, (out_f, in_f) in enumerate(dims, start=1):
        key, kw, kb = jax.random.split(key, 3)
        bound = 1.0 / jnp.sqrt(in_f)
        params[f"w{i}"] = jax.random.uniform(
            kw, (out_f, in_f), jnp.float32, -bound, bound)
        params[f"b{i}"] = jax.random.uniform(
            kb, (out_f,), jnp.float32, -bound, bound)
    return params


def mlp_reference(x, params):
    h = jnp.maximum(x @ params["w1"].T + params["b1"], 0.0)
    h = jnp.maximum(h @ params["w2"].T + params["b2"], 0.0)
    return h @ params["w3"].T + params["b3"]


if __name__ == "__main__":
    key = jax.random.PRNGKey(0)
    key, kx = jax.random.split(key)
    B = 8
    x = jax.random.normal(kx, (B, 4000), jnp.float32)
    params = init_params(key)

    prepared = prepare_params(params)              # one-time layout conversion
    out = jax.jit(mlp_forward)(x, prepared)
    out = jax.block_until_ready(out)

    ref = mlp_reference(x, params)                 # f32 reference
    assert out.shape == (B, 2), out.shape
    # Tolerance relaxed vs. the pure-f32 version because w1 is bf16.
    assert jnp.allclose(out, ref, atol=2e-2, rtol=2e-2), (
        float(jnp.max(jnp.abs(out - ref))))
    print("KERNEL_OK")
</pallas_src>

<mosaic_0001>
module attributes {stable_mosaic.version = 11 : i64} {
  func.func @mlp_kernel(%arg0: i32, %arg1: i32, %arg2: memref<8x1024xf32, #tpu.memory_space<vmem>>, %arg3: memref<1024x512xbf16, #tpu.memory_space<vmem>>, %arg4: memref<1x512xf32, #tpu.memory_space<vmem>>, %arg5: memref<512x64xf32, #tpu.memory_space<vmem>>, %arg6: memref<1x64xf32, #tpu.memory_space<vmem>>, %arg7: memref<64x2xf32, #tpu.memory_space<vmem>>, %arg8: memref<1x2xf32, #tpu.memory_space<vmem>>, %arg9: memref<8x2xf32, #tpu.memory_space<vmem>>, %arg10: memref<8x512xf32, #tpu.memory_space<vmem>>) attributes {dimension_semantics = [#tpu.dimension_semantics<parallel>, #tpu.dimension_semantics<arbitrary>], iteration_bounds = array<i64: 1, 4>, scalar_prefetch = 0 : i64, scratch_operands = 1 : i64, tpu.core_type = #tpu.core_type<tc>, window_params = [{transform_indices = @transform_0, window_bounds = array<i64: 8, 1024>}, {transform_indices = @transform_1, window_bounds = array<i64: 1024, 512>}, {pipeline_mode = #tpu.pipeline_mode<synchronous>, transform_indices = @transform_2, window_bounds = array<i64: 1, 512>}, {pipeline_mode = #tpu.pipeline_mode<synchronous>, transform_indices = @transform_3, window_bounds = array<i64: 512, 64>}, {pipeline_mode = #tpu.pipeline_mode<synchronous>, transform_indices = @transform_4, window_bounds = array<i64: 1, 64>}, {pipeline_mode = #tpu.pipeline_mode<synchronous>, transform_indices = @transform_5, window_bounds = array<i64: 64, 2>}, {pipeline_mode = #tpu.pipeline_mode<synchronous>, transform_indices = @transform_6, window_bounds = array<i64: 1, 2>}, {transform_indices = @transform_7, window_bounds = array<i64: 8, 2>}]} {
    %c0_i32 = arith.constant 0 : i32
    %0 = arith.cmpi eq, %arg1, %c0_i32 : i32
    %1 = arith.extui %0 : i1 to i32
    %c0_i32_0 = arith.constant 0 : i32
    %2 = arith.cmpi ne, %1, %c0_i32_0 : i32
    scf.if %2 {
      %cst_9 = arith.constant 0.000000e+00 : f32
      %13 = vector.broadcast %cst_9 : f32 to vector<8x512xf32>
      %c0_10 = arith.constant 0 : index
      %c0_11 = arith.constant 0 : index
      %14 = vector.load %arg10[%c0_10, %c0_11] : memref<8x512xf32, #tpu.memory_space<vmem>>, vector<8x512xf32>
      tpu.vector_store %arg10[%c0_10, %c0_11], %13 {strides = array<i32>} : memref<8x512xf32, #tpu.memory_space<vmem>>, vector<8x512xf32>,
    } else {
    }
    %c0 = arith.constant 0 : index
    %c0_1 = arith.constant 0 : index
    %3 = vector.load %arg2[%c0, %c0_1] : memref<8x1024xf32, #tpu.memory_space<vmem>>, vector<8x1024xf32>
    %4 = arith.truncf %3 : vector<8x1024xf32> to vector<8x1024xbf16>
    %c0_2 = arith.constant 0 : index
    %c0_3 = arith.constant 0 : index
    %5 = vector.load %arg10[%c0_2, %c0_3] : memref<8x512xf32, #tpu.memory_space<vmem>>, vector<8x512xf32>
    %c0_4 = arith.constant 0 : index
    %c0_5 = arith.constant 0 : index
    %6 = vector.load %arg3[%c0_4, %c0_5] : memref<1024x512xbf16, #tpu.memory_space<vmem>>, vector<1024x512xbf16>
    %cst = arith.constant dense<0.000000e+00> : vector<8x512xf32>
    %7 = tpu.matmul %4, %6, %cst {dimension_numbers = #tpu.dot_dimension_numbers<[1], [0], [0], [1], [0, 0, 1, 1], [], []>} : vector<8x1024xbf16>, vector<1024x512xbf16>, vector<8x512xf32> -> vector<8x512xf32>
    %8 = arith.addf %5, %7 : vector<8x512xf32>
    %c0_6 = arith.constant 0 : index
    %c0_7 = arith.constant 0 : index
    %9 = vector.load %arg10[%c0_6, %c0_7] : memref<8x512xf32, #tpu.memory_space<vmem>>, vector<8x512xf32>
    tpu.vector_store %arg10[%c0_6, %c0_7], %8 {strides = array<i32>} : memref<8x512xf32, #tpu.memory_space<vmem>>, vector<8x512xf32>,
    %c3_i32 = arith.constant 3 : i32
    %10 = arith.cmpi eq, %arg1, %c3_i32 : i32
    %11 = arith.extui %10 : i1 to i32
    %c0_i32_8 = arith.constant 0 : i32
    %12 = arith.cmpi ne, %11, %c0_i32_8 : i32
    scf.if %12 {
      %c0_9 = arith.constant 0 : index
      %c0_10 = arith.constant 0 : index
      %13 = vector.load %arg10[%c0_9, %c0_10] : memref<8x512xf32, #tpu.memory_space<vmem>>, vector<8x512xf32>
      %c0_11 = arith.constant 0 : index
      %c0_12 = arith.constant 0 : index
      %14 = vector.load %arg4[%c0_11, %c0_12] : memref<1x512xf32, #tpu.memory_space<vmem>>, vector<1x512xf32>
      %15 = vector.broadcast %14 : vector<1x512xf32> to vector<8x512xf32>
      %16 = arith.addf %13, %15 : vector<8x512xf32>
      %cst_13 = arith.constant 0.000000e+00 : f32
      %17 = vector.broadcast %cst_13 : f32 to vector<8x512xf32>
      %18 = arith.maximumf %16, %17 : vector<8x512xf32>
      %c0_14 = arith.constant 0 : index
      %c0_15 = arith.constant 0 : index
      %19 = vector.load %arg5[%c0_14, %c0_15] : memref<512x64xf32, #tpu.memory_space<vmem>>, vector<512x64xf32>
      %cst_16 = arith.constant dense<0.000000e+00> : vector<8x64xf32>
      %20 = tpu.matmul %18, %19, %cst_16 {dimension_numbers = #tpu.dot_dimension_numbers<[1], [0], [0], [1], [0, 0, 1, 1], [], []>} : vector<8x512xf32>, vector<512x64xf32>, vector<8x64xf32> -> vector<8x64xf32>
      %c0_17 = arith.constant 0 : index
      %c0_18 = arith.constant 0 : index
      %21 = vector.load %arg6[%c0_17, %c0_18] : memref<1x64xf32, #tpu.memory_space<vmem>>, vector<1x64xf32>
      %22 = vector.broadcast %21 : vector<1x64xf32> to vector<8x64xf32>
      %23 = arith.addf %20, %22 : vector<8x64xf32>
      %cst_19 = arith.constant 0.000000e+00 : f32
      %24 = vector.broadcast %cst_19 : f32 to vector<8x64xf32>
      %25 = arith.maximumf %23, %24 : vector<8x64xf32>
      %c0_20 = arith.constant 0 : index
      %c0_21 = arith.constant 0 : index
      %26 = vector.load %arg7[%c0_20, %c0_21] : memref<64x2xf32, #tpu.memory_space<vmem>>, vector<64x2xf32>
      %cst_22 = arith.constant dense<0.000000e+00> : vector<8x2xf32>
      %27 = tpu.matmul %25, %26, %cst_22 {dimension_numbers = #tpu.dot_dimension_numbers<[1], [0], [0], [1], [0, 0, 1, 1], [], []>} : vector<8x64xf32>, vector<64x2xf32>, vector<8x2xf32> -> vector<8x2xf32>
      %c0_23 = arith.constant 0 : index
      %c0_24 = arith.constant 0 : index
      %28 = vector.load %arg8[%c0_23, %c0_24] : memref<1x2xf32, #tpu.memory_space<vmem>>, vector<1x2xf32>
      %29 = vector.broadcast %28 : vector<1x2xf32> to vector<8x2xf32>
      %30 = arith.addf %27, %29 : vector<8x2xf32>
      %c0_25 = arith.constant 0 : index
      %c0_26 = arith.constant 0 : index
      %31 = vector.load %arg9[%c0_25, %c0_26] : memref<8x2xf32, #tpu.memory_space<vmem>>, vector<8x2xf32>
      tpu.vector_store %arg9[%c0_25, %c0_26], %30 {strides = array<i32>} : memref<8x2xf32, #tpu.memory_space<vmem>>, vector<8x2xf32>,
    } else {
    }
    return
  }
  func.func @transform_0(%arg0: i32, %arg1: i32) -> (i32, i32) {
    %c0_i32 = arith.constant 0 : i32
    return %arg0, %arg1 : i32, i32
  }
  func.func @transform_1(%arg0: i32, %arg1: i32) -> (i32, i32) {
    %c0_i32 = arith.constant 0 : i32
    %c0_i32_0 = arith.constant 0 : i32
    return %arg1, %c0_i32 : i32, i32
  }
  func.func @transform_2(%arg0: i32, %arg1: i32) -> (i32, i32) {
    %c0_i32 = arith.constant 0 : i32
    %c0_i32_0 = arith.constant 0 : i32
    %c0_i32_1 = arith.constant 0 : i32
    return %c0_i32, %c0_i32_0 : i32, i32
  }
  func.func @transform_3(%arg0: i32, %arg1: i32) -> (i32, i32) {
    %c0_i32 = arith.constant 0 : i32
    %c0_i32_0 = arith.constant 0 : i32
    %c0_i32_1 = arith.constant 0 : i32
    return %c0_i32, %c0_i32_0 : i32, i32
  }
  func.func @transform_4(%arg0: i32, %arg1: i32) -> (i32, i32) {
    %c0_i32 = arith.constant 0 : i32
    %c0_i32_0 = arith.constant 0 : i32
    %c0_i32_1 = arith.constant 0 : i32
    return %c0_i32, %c0_i32_0 : i32, i32
  }
  func.func @transform_5(%arg0: i32, %arg1: i32) -> (i32, i32) {
    %c0_i32 = arith.constant 0 : i32
    %c0_i32_0 = arith.constant 0 : i32
    %c0_i32_1 = arith.constant 0 : i32
    return %c0_i32, %c0_i32_0 : i32, i32
  }
  func.func @transform_6(%arg0: i32, %arg1: i32) -> (i32, i32) {
    %c0_i32 = arith.constant 0 : i32
    %c0_i32_0 = arith.constant 0 : i32
    %c0_i32_1 = arith.constant 0 : i32
    return %c0_i32, %c0_i32_0 : i32, i32
  }
  func.func @transform_7(%arg0: i32, %arg1: i32) -> (i32, i32) {
    %c0_i32 = arith.constant 0 : i32
    %c0_i32_0 = arith.constant 0 : i32
    return %arg0, %c0_i32 : i32, i32
  }
}

</mosaic_0001>

<bundles_post_ra>
// kernel: mlp_forward.1
= control target key start
LH: loop header
LB: loop body
LE: loop exit
PB: predicated region body
PF: predicated region fallthrough
CT: control target
= control target key end

     0   :  { %12 = vsyncpa [#allocation4], 0  ;;  %s4644_s0 = inlined_call_operand.vmem [shape: f32[8,4096], index: 0, kind: input, shape index: {}]   ;;  %s4645_s1 = inlined_call_operand.hbm [shape: bf16[4096,512], index: 1, kind: input, shape index: {}]   ;;  %s4646_s2 = inlined_call_operand.hbm [shape: f32[1,512], index: 2, kind: input, shape index: {}]   ;;  %s4647_s3 = inlined_call_operand.vmem [shape: f32[512,64], index: 3, kind: input, shape index: {}]   ;;  %s4648_s4 = inlined_call_operand.hbm [shape: f32[1,64], index: 4, kind: input, shape index: {}]   ;;  %s4649_s5 = inlined_call_operand.vmem [shape: f32[64,2], index: 5, kind: input, shape index: {}]   ;;  %s4650_s6 = inlined_call_operand.hbm [shape: f32[1,2], index: 6, kind: input, shape index: {}]   ;;  %s4651_s7 = inlined_call_operand.vmem [shape: f32[8,2], index: 7, kind: output, shape index: {}]  }
   0x1   :  { %14 = vsyncpa [#allocation4 + $0x1], 0 }
   0x2   :  { %15 = vsyncpa [#allocation6], 0 }
   0x3   :  { %16 = vsyncpa [#allocation9], 0  ;;  %s3900_s24 = smov 0   ;;  %s3902_s25 = smov 0  }
   0x4   :  { %s3904_s26 = smov 0   ;;  %s3906_s27 = smov 0  }
   0x5   :  { %s3908_s28 = smov 0   ;;  %s3910_s29 = smov 0  }
   0x6 LB: > { %s2743_s30 = sadd.s32 4294967295, %s3848_s29   ;;  %p82_p0 = scmp.ne.s32.totalorder %s3832_s25, %s3828_s24  ;;  %s3848_s29 = sphi %s3910_s29, %s22_s29   ;;  %s3844_s28 = sphi %s3908_s28, %s4669_s28   ;;  %s3840_s27 = sphi %s3906_s27, %s4668_s27   ;;  %s3836_s26 = sphi %s3904_s26, %s4667_s26   ;;  %s3832_s25 = sphi %s3902_s25, %s4666_s25   ;;  %s3828_s24 = sphi %s3900_s24, %s4665_s24  }
   0x7   : > { %p3930_p1 = scmp.eq.s32.totalorder %s2743_s30, 0  ;;  %p2744_p2 = scmp.ge.s32.totalorder %s3848_s29, 1 }
   0x8   : > { %p224_p3 = scmp.lt.s32.totalorder %s3848_s29, 5  ;;  %s3850_s11 = smov [#allocation5]  }
   0x9   : > { %s4656_s8 = scalar_select %p3930_p1, 1, 0 }
   0xa   : > { %p3938_p4 = por %p3930_p1, %p82_p0  ;;  %p3942_p5 = pnand %p2744_p2, %p224_p3 }
   0xb   : > { %s237_s12 = sshll.u32 %s3850_s11, 4  ;;  %s3851_s13 = smov [#allocation7]   ;;  %s238_s12 = int_to_ptr.vmem [resolvable:$true] %s237_s12 }
   0xc   : > { %s4657_s9 = scalar_select %p3938_p4, 1, 0 }
   0xd   : > { %s4658_s10 = scalar_select %p3942_p5, 1, 0 }
   0xe   : > { %p3214_p6 = pneg %p3942_p5  ;;  %s251_s14 = sshll.u32 %s3851_s13, 4  ;;  %s3954_s14 = int_to_ptr.vmem [resolvable:$true] %s251_s14 }
   0xf   : > { %s3852_s16 = smov [#allocation8]   ;;  %s3676_s20 = scalar_lea.hbm %s4646_s2, 64 }
  0x10   : > { %p3950_p7 = pnand %p3214_p6, %p3930_p1  ;;  %s265_s17 = sshll.u32 %s3852_s16, 4  ;;  %s3956_s17 = int_to_ptr.vmem [resolvable:$true] %s265_s17 }
  0x11   : > { %p3677_p8 = scmp.ne.s32.totalorder %s4646_s2, %s3676_s20  ;;  %p3683_p12 = scmp.lt.u32.totalorder %s3676_s20, %s4646_s2 }
  0x12   : > { %p3966_p9 = pneg %p3950_p7 }
  0x14   : > { %p3679_p10 = pnand %p3966_p9, %p3677_p8 }
  0x16   : > { %p3680_p11 = pneg %p3679_p10 }
  0x18   : > { %p3685_p13 = pnand %p3683_p12, %p3680_p11 }
  0x1a   : > { %3688 = shalt.err (!%p3685_p13)
}
  0x1b   : > { %s3689_s11 = scalar_lea.vmem %s238_s12, 64  ;;  %p3697_p6 = scmp.lt.s32.totalorder %s238_s12, %s238_s12 }
  0x1c   : > { %p3690_p0 = scmp.ne.s32.totalorder %s238_s12, %s3689_s11  ;;  %p3698_p1 = scmp.lt.s32.totalorder %s3689_s11, %s3689_s11 }
  0x1e   : > { %p3692_p2 = pnand %p3690_p0, %p3966_p9  ;;  %p3699_p4 = por %p3698_p1, %p3697_p6 }
  0x20   : > { %p3693_p3 = pneg %p3692_p2 }
  0x22   : > { %p3700_p5 = pnand %p3699_p4, %p3693_p3 }
  0x24   : > { %3703 = shalt.err (!%p3700_p5)
}
  0x25   : > { %3217 = dma.hbm_to_vmem [thread:$0]  (!%p3950_p7), %s4646_s2, 64, %s238_s12, [#allocation6]  }
  0x26   : > { %s3704_s20 = scalar_lea.hbm %s4648_s4, 16 }
  0x27   : > { %p3705_p8 = scmp.ne.s32.totalorder %s4648_s4, %s3704_s20  ;;  %p3711_p4 = scmp.lt.u32.totalorder %s3704_s20, %s4648_s4 }
  0x29   : > { %p3707_p10 = pnand %p3705_p8, %p3966_p9 }
  0x2b   : > { %p3708_p1 = pneg %p3707_p10 }
  0x2d   : > { %p3713_p5 = pnand %p3711_p4, %p3708_p1 }
  0x2f   : > { %3716 = shalt.err (!%p3713_p5)
}
  0x30   : > { %s3717_s12 = scalar_lea.vmem %s3954_s14, 16  ;;  %s3724_s11 = scalar_lea.vmem %s3954_s14, 32 }
  0x31   : > { %p3718_p11 = scmp.ne.s32.totalorder %s3954_s14, %s3717_s12  ;;  %p3725_p0 = scmp.lt.s32.totalorder %s3954_s14, %s3954_s14 }
  0x32   : > { %p3726_p2 = scmp.lt.s32.totalorder %s3724_s11, %s3717_s12 }
  0x33   : > { %p3720_p12 = pnand %p3718_p11, %p3966_p9 }
  0x34   : > { %p3727_p3 = por %p3726_p2, %p3725_p0 }
  0x35   : > { %p3721_p13 = pneg %p3720_p12 }
  0x37   : > { %p3728_p6 = pnand %p3727_p3, %p3721_p13 }
  0x39   : > { %3731 = shalt.err (!%p3728_p6)
}
  0x3a   : > { %3220 = dma.hbm_to_vmem [thread:$0]  (!%p3950_p7), %s4648_s4, 16, %s3954_s14, [#allocation6]  }
  0x3b   : > { %s3732_s20 = scalar_lea.hbm %s4650_s6, 16 }
  0x3c   : > { %p3733_p8 = scmp.ne.s32.totalorder %s4650_s6, %s3732_s20  ;;  %p3739_p4 = scmp.lt.u32.totalorder %s3732_s20, %s4650_s6 }
  0x3e   : > { %p3735_p10 = pnand %p3733_p8, %p3966_p9 }
  0x40   : > { %p3736_p1 = pneg %p3735_p10 }
  0x42   : > { %p3741_p5 = pnand %p3739_p4, %p3736_p1 }
  0x44   : > { %3744 = shalt.err (!%p3741_p5)
}
  0x45   : > { %s3745_s14 = scalar_lea.vmem %s3956_s17, 16  ;;  %s3752_s12 = scalar_lea.vmem %s3956_s17, 32 }
  0x46   : > { %p3746_p11 = scmp.ne.s32.totalorder %s3956_s17, %s3745_s14  ;;  %p3753_p0 = scmp.lt.s32.totalorder %s3956_s17, %s3956_s17 }
  0x47   : > { %p3754_p2 = scmp.lt.s32.totalorder %s3752_s12, %s3745_s14 }
  0x48   : > { %p3748_p12 = pnand %p3746_p11, %p3966_p9 }
  0x49   : > { %p3755_p3 = por %p3754_p2, %p3753_p0 }
  0x4a   : > { %p3749_p13 = pneg %p3748_p12 }
  0x4c   : > { %p3756_p6 = pnand %p3755_p3, %p3749_p13 }
  0x4e   : > { %3759 = shalt.err (!%p3756_p6)
}
  0x4f   : > { %3223 = dma.hbm_to_vmem [thread:$0]  (!%p3950_p7), %s4650_s6, 16, %s3956_s17, [#allocation9]  }
  0x50   : > { %s69_s23 = sadd.s32 1, %s3836_s26  ;;  %s31_s16 = sadd.s32 1, %s3844_s28 }
  0x51   : > { %p76_p9 = scmp.ne.s32.totalorder %s3836_s26, %s3832_s25  ;;  %p32_p8 = scmp.ge.s32.totalorder %s31_s16, 4 }
  0x52   : > { %p77_p10 = scmp.eq.s32.totalorder %s3848_s29, 0  ;;  %p3231_p1 = scmp.lt.s32.totalorder %s3848_s29, 4 }
  0x53   : > { %s289_s15 = sand.u32 1, %s3836_s26   ;;  %s4671_s16 = smov (%p32_p8, %s31_s16), 0 }
  0x54   : > { %p78_p4 = por %p77_p10, %p76_p9  ;;  %s66_s18 = ssub.s32 %s3844_s28, %s4671_s16 }
  0x55   : > { %s2749_s19 = sshll.u32 %s289_s15, 11  ;;  %p67_p5 = scmp.eq.s32.totalorder %s66_s18, 0 }
  0x56   : > { %s3025_s20 = sshll.u32 %s3844_s28, 15  ;;  %s293_s21 = scalar_lea.vmem [#allocation3], %s2749_s19 }
  0x57   : > { %s301_s22 = sshll.u32 %s293_s21, 4  ;;  %s4048_s14 = scalar_lea.hbm %s4645_s1, %s3025_s20  ;;  %s4050_s22 = int_to_ptr.vmem [resolvable:$true] %s301_s22 }
  0x58   : > { %s4043_s17 = scalar_select %p67_p5, %s3836_s26, %s69_s23  }
  0x59   : > { %p4054_p7 = pnand %p3231_p1, %p78_p4  ;;  %s4058_s11 = scalar_lea.sflag [#allocation4], %s289_s15 }
  0x5a   : > { %s3760_s13 = scalar_lea.hbm %s4048_s14, 32768  ;;  %s3765_s19 = scalar_lea.hbm %s4645_s1, 131072 }
  0x5b   : > { %p3761_p11 = scmp.ne.s32.totalorder %s4048_s14, %s3760_s13  ;;  %p3762_p12 = pneg %p4054_p7 }
  0x5c   : > { %p3766_p2 = scmp.lt.u32.totalorder %s4048_s14, %s4645_s1  ;;  %p3767_p3 = scmp.lt.u32.totalorder %s3765_s19, %s3760_s13 }
  0x5d   : > { %p3763_p13 = pnand %p3762_p12, %p3761_p11  ;;  %p3769_p9 = scmp.lt.u32.totalorder %s3760_s13, %s4048_s14 }
  0x5e   : > { %p3768_p6 = por %p3767_p3, %p3766_p2 }
  0x5f   : > { %p3764_p0 = pneg %p3763_p13 }
  0x60   : > { %p3770_p8 = por %p3769_p9, %p3768_p6 }
  0x62   : > { %p3771_p10 = pnand %p3770_p8, %p3764_p0 }
  0x64   : > { %3774 = shalt.err (!%p3771_p10)
}
  0x65   : > { %s3775_s15 = scalar_lea.vmem %s4050_s22, 32768  ;;  %s3853_s24 = smov [#allocation3]  }
  0x66   : > { %p3776_p1 = scmp.ne.s32.totalorder %s4050_s22, %s3775_s15  ;;  %s3780_s30 = sshll.u32 %s3853_s24, 4  ;;  %s3781_s30 = int_to_ptr.vmem [resolvable:$false] %s3780_s30 }
  0x67   : > { %s3782_s23 = scalar_lea.vmem %s3781_s30, 65536  ;;  %p3783_p11 = scmp.lt.s32.totalorder %s4050_s22, %s3781_s30 }
  0x68   : > { %p3778_p4 = pnand %p3776_p1, %p3762_p12  ;;  %p3784_p13 = scmp.lt.s32.totalorder %s3782_s23, %s3775_s15 }
  0x6a   : > { %p3779_p5 = pneg %p3778_p4  ;;  %p3785_p2 = por %p3784_p13, %p3783_p11 }
  0x6c   : > { %p3786_p3 = pnand %p3785_p2, %p3779_p5 }
  0x6e   : > { %3789 = shalt.err (!%p3786_p3)
}
  0x6f   : > { %s3854_s13 = smov 256   ;;  %s3855_s18 = smov 16  }
  0x70   : > { %3227 = dma.hbm_to_vmem [thread:$0]  (!%p4054_p7), %s4048_s14, 32768, %s4050_s22, %s4058_s11, %s3854_s13, %s3854_s13, %s3855_s18  }
  0x71   : > { %p4662_p12 = scmp.ne.s32.totalorder %s4658_s10, 0 }
  0x72   : > { %s315_s19 = sand.u32 (!%p4662_p12), 1, %s3832_s25   ;;  %p4663_p0 = scmp.ne.s32.totalorder (!%p4662_p12), %s4657_s9, 0 }
  0x73   : > { %313 = sbr.rel (%p4662_p12) target bundleno = 1065 (0x429), region = 48  ;;  %s2754_s20 = sshll.u32 (!%p4662_p12), %s315_s19, 11 }
  0x74   : > { %s316_s21 = scalar_lea.sflag (!%p4662_p12), [#allocation4], %s315_s19  ;;  %s4089_s15 = scalar_lea.vmem (!%p4662_p12), [#allocation3], %s2754_s20 }
  0x7a   : > { %3815 = dma.done.wait (%p4663_p0), %s316_s21, 32768  }
  0x7b   : > { %3817 = vsyncadd (%p4663_p0), %s316_s21, 4294934528  ;;  %p4664_p6 = scmp.ne.s32.totalorder %s4656_s8, 0 }
  0x7d   : > { %3819 = dma.done.wait (%p4664_p6), [#allocation6], 80  }
  0x7e   : > { %3821 = vsyncadd (%p4664_p6), [#allocation6], 4294967216 }
  0x7f   : > { %3823 = dma.done.wait (%p4664_p6), [#allocation9], 16  }
  0x80   : > { %3825 = vsyncadd (%p4664_p6), [#allocation9], 4294967280  ;;  %s2758_s10 = sshll.u32 %s3840_s27, 3  ;;  %p2760_p9 = scmp.ne.s32.totalorder %s3840_s27, 0 }
  0x81   : > { %p373_p7 = scmp.lt.s32.totalorder %s2758_s10, 31  ;;  %v3856_v0 = vmov (!%p2760_p9), 0.0  }
  0x82   : > { %388 = sbr.rel (%p2760_p9) target bundleno = 137 (0x89), region = 68  ;;  %389 = vst [vmem:[#allocation2] sm:$0xff] (!%p2760_p9), %v3856_v0  ;;  %390 = vst [vmem:[#allocation2 + $0x8] sm:$0xff] (!%p2760_p9), %v3856_v0 }
  0x83   : > { %s4673_s10 = smov (!%p373_p7, %s2758_s10), 31  ;;  %391 = vst [vmem:[#allocation2 + $0x10] sm:$0xff] (!%p2760_p9), %v3856_v0  ;;  %392 = vst [vmem:[#allocation2 + $0x18] sm:$0xff] (!%p2760_p9), %v3856_v0 }
  0x84   : > { %s2759_s22 = sshll.u32 %s4673_s10, 3 }
  0x85   : > { %s4107_s12 = scalar_lea.vmem %s4644_s0, %s2759_s22 }
  0x89 PF: > { %v3292_v1 = vld [vmem:[%s4089_s15 + $0x4] ss:$16 sps:$4 sm:$0xff]   ;;  %v3296_v3 = vld [vmem:[%s4089_s15] ss:$16 sps:$4 sm:$0xff]   ;;  %v394_v47 = vld [vmem:[%s4107_s12 + $0x8] sm:$0xff]  ;;  %p3017_p8 = scmp.ne.s32.totalorder %s3840_s27, 3 }
  0x8a   : > { %v3294_v2 = vld [vmem:[%s4089_s15 + $0x204] ss:$16 sps:$4 sm:$0xff]   ;;  %1949 = vmatprep.subr.bf16.mxu0 %v3292_v1  ;;  %v3297_v4 = vld [vmem:[%s4089_s15 + $0x200] ss:$16 sps:$4 sm:$0xff]   ;;  %v4159_v50 = vpack.c.bf16 %v394_v47, %v394_v47  ;;  %v396_v51 = vld [vmem:[%s4107_s12 + $0x18] sm:$0xff]  ;;  %vm3858_vm0 = vmmov (!%p3017_p8), 0  }
  0x8b   : > { %1990 = vmatprep.subr.bf16.mxu1 %v3294_v2  ;;  %v3298_v5 = vld [vmem:[%s4089_s15 + $0x24] ss:$16 sps:$4 sm:$0xff]   ;;  %1950 = vmatpush1.bf16.msra.mxu0 %v3296_v3  ;;  %v3302_v7 = vld [vmem:[%s4089_s15 + $0x20] ss:$16 sps:$4 sm:$0xff]   ;;  %v4163_v53 = vpack.c.bf16 %v396_v51, %v396_v51  ;;  %vm2550_vm1 = vcmask (!%p3017_p8), 523264   ;;  %vm2624_vm2 = vcmask (!%p3017_p8), 15360  }
  0x8c   : > { %1991 = vmatpush1.bf16.msra.mxu1 %v3297_v4  ;;  %v3300_v6 = vld [vmem:[%s4089_s15 + $0x224] ss:$16 sps:$4 sm:$0xff]   ;;  %1951 = vmatprep.subr.bf16.mxu0 %v3298_v5  ;;  %v3303_v8 = vld [vmem:[%s4089_s15 + $0x220] ss:$16 sps:$4 sm:$0xff]  }
  0x8d   : > { %1992 = vmatprep.subr.bf16.mxu1 %v3300_v6  ;;  %v3304_v9 = vld [vmem:[%s4089_s15 + $0x44] ss:$16 sps:$4 sm:$0xff]   ;;  %v3308_v11 = vld [vmem:[%s4089_s15 + $0x40] ss:$16 sps:$4 sm:$0xff]   ;;  %1981 = vmatprep.mubr.bf16.mxu0 %v4159_v50 }
  0x8e   : > { %v3306_v10 = vld [vmem:[%s4089_s15 + $0x244] ss:$16 sps:$4 sm:$0xff]   ;;  %v3309_v12 = vld [vmem:[%s4089_s15 + $0x240] ss:$16 sps:$4 sm:$0xff]   ;;  %2022 = vmatprep.mubr.bf16.mxu1 %v4163_v53 }
  0x8f   : > { %1952 = vmatpush1.bf16.msra.mxu0 %v3302_v7  ;;  %v3310_v13 = vld [vmem:[%s4089_s15 + $0x64] ss:$16 sps:$4 sm:$0xff]   ;;  %v3314_v15 = vld [vmem:[%s4089_s15 + $0x60] ss:$16 sps:$4 sm:$0xff]  }
  0x90   : > { %1993 = vmatpush1.bf16.msra.mxu1 %v3303_v8  ;;  %1953 = vmatprep.subr.bf16.mxu0 %v3304_v9  ;;  %v3312_v14 = vld [vmem:[%s4089_s15 + $0x264] ss:$16 sps:$4 sm:$0xff]   ;;  %v3315_v16 = vld [vmem:[%s4089_s15 + $0x260] ss:$16 sps:$4 sm:$0xff]  }
  0x91   : > { %1994 = vmatprep.subr.bf16.mxu1 %v3306_v10  ;;  %v3316_v17 = vld [vmem:[%s4089_s15 + $0x84] ss:$16 sps:$4 sm:$0xff]   ;;  %v3320_v19 = vld [vmem:[%s4089_s15 + $0x80] ss:$16 sps:$4 sm:$0xff]  }
  0x92   : > { %v3318_v18 = vld [vmem:[%s4089_s15 + $0x284] ss:$16 sps:$4 sm:$0xff]   ;;  %v3321_v20 = vld [vmem:[%s4089_s15 + $0x280] ss:$16 sps:$4 sm:$0xff]  }
  0x93   : > { %1954 = vmatpush1.bf16.msra.mxu0 %v3308_v11  ;;  %v3322_v21 = vld [vmem:[%s4089_s15 + $0xa4] ss:$16 sps:$4 sm:$0xff]   ;;  %v3326_v23 = vld [vmem:[%s4089_s15 + $0xa0] ss:$16 sps:$4 sm:$0xff]  }
  0x94   : > { %1995 = vmatpush1.bf16.msra.mxu1 %v3309_v12  ;;  %1955 = vmatprep.subr.bf16.mxu0 %v3310_v13  ;;  %v3324_v22 = vld [vmem:[%s4089_s15 + $0x2a4] ss:$16 sps:$4 sm:$0xff]   ;;  %v3327_v24 = vld [vmem:[%s4089_s15 + $0x2a0] ss:$16 sps:$4 sm:$0xff]  }
  0x95   : > { %1996 = vmatprep.subr.bf16.mxu1 %v3312_v14  ;;  %v3328_v25 = vld [vmem:[%s4089_s15 + $0xc4] ss:$16 sps:$4 sm:$0xff]   ;;  %v3332_v27 = vld [vmem:[%s4089_s15 + $0xc0] ss:$16 sps:$4 sm:$0xff]  }
  0x96   : > { %v3330_v26 = vld [vmem:[%s4089_s15 + $0x2c4] ss:$16 sps:$4 sm:$0xff]   ;;  %v3333_v28 = vld [vmem:[%s4089_s15 + $0x2c0] ss:$16 sps:$4 sm:$0xff]  }
  0x97   : > { %1956 = vmatpush1.bf16.msra.mxu0 %v3314_v15  ;;  %v3334_v29 = vld [vmem:[%s4089_s15 + $0xe4] ss:$16 sps:$4 sm:$0xff]   ;;  %v3338_v31 = vld [vmem:[%s4089_s15 + $0xe0] ss:$16 sps:$4 sm:$0xff]  }
  0x98   : > { %1997 = vmatpush1.bf16.msra.mxu1 %v3315_v16  ;;  %1957 = vmatprep.subr.bf16.mxu0 %v3316_v17  ;;  %v3336_v30 = vld [vmem:[%s4089_s15 + $0x2e4] ss:$16 sps:$4 sm:$0xff]   ;;  %v3339_v32 = vld [vmem:[%s4089_s15 + $0x2e0] ss:$16 sps:$4 sm:$0xff]  }
  0x99   : > { %1998 = vmatprep.subr.bf16.mxu1 %v3318_v18  ;;  %v3340_v33 = vld [vmem:[%s4089_s15 + $0x104] ss:$16 sps:$4 sm:$0xff]   ;;  %v3344_v35 = vld [vmem:[%s4089_s15 + $0x100] ss:$16 sps:$4 sm:$0xff]  }
  0x9a   : > { %v3342_v34 = vld [vmem:[%s4089_s15 + $0x304] ss:$16 sps:$4 sm:$0xff]   ;;  %v3345_v36 = vld [vmem:[%s4089_s15 + $0x300] ss:$16 sps:$4 sm:$0xff]  }
  0x9b   : > { %1958 = vmatpush1.bf16.msra.mxu0 %v3320_v19  ;;  %v3346_v37 = vld [vmem:[%s4089_s15 + $0x124] ss:$16 sps:$4 sm:$0xff]   ;;  %v3350_v39 = vld [vmem:[%s4089_s15 + $0x120] ss:$16 sps:$4 sm:$0xff]  }
  0x9c   : > { %1999 = vmatpush1.bf16.msra.mxu1 %v3321_v20  ;;  %1959 = vmatprep.subr.bf16.mxu0 %v3322_v21  ;;  %v3348_v38 = vld [vmem:[%s4089_s15 + $0x324] ss:$16 sps:$4 sm:$0xff]   ;;  %v3351_v40 = vld [vmem:[%s4089_s15 + $0x320] ss:$16 sps:$4 sm:$0xff]  }
  0x9d   : > { %2000 = vmatprep.subr.bf16.mxu1 %v3324_v22  ;;  %v3352_v41 = vld [vmem:[%s4089_s15 + $0x144] ss:$16 sps:$4 sm:$0xff]   ;;  %v3356_v43 = vld [vmem:[%s4089_s15 + $0x140] ss:$16 sps:$4 sm:$0xff]  }
  0x9e   : > { %v3354_v42 = vld [vmem:[%s4089_s15 + $0x344] ss:$16 sps:$4 sm:$0xff]   ;;  %v3357_v44 = vld [vmem:[%s4089_s15 + $0x340] ss:$16 sps:$4 sm:$0xff]  }
  0x9f   : > { %1960 = vmatpush1.bf16.msra.mxu0 %v3326_v23  ;;  %v3358_v45 = vld [vmem:[%s4089_s15 + $0x164] ss:$16 sps:$4 sm:$0xff]   ;;  %v3362_v48 = vld [vmem:[%s4089_s15 + $0x160] ss:$16 sps:$4 sm:$0xff]  }
  0xa0   : > { %2001 = vmatpush1.bf16.msra.mxu1 %v3327_v24  ;;  %1961 = vmatprep.subr.bf16.mxu0 %v3328_v25  ;;  %v3360_v46 = vld [vmem:[%s4089_s15 + $0x364] ss:$16 sps:$4 sm:$0xff]   ;;  %v3363_v49 = vld [vmem:[%s4089_s15 + $0x360] ss:$16 sps:$4 sm:$0xff]  }
  0xa1   : > { %2002 = vmatprep.subr.bf16.mxu1 %v3330_v26  ;;  %v3364_v52 = vld [vmem:[%s4089_s15 + $0x184] ss:$16 sps:$4 sm:$0xff]   ;;  %v3368_v55 = vld [vmem:[%s4089_s15 + $0x180] ss:$16 sps:$4 sm:$0xff]  }
  0xa2   : > { %v3366_v54 = vld [vmem:[%s4089_s15 + $0x384] ss:$16 sps:$4 sm:$0xff]   ;;  %v3369_v56 = vld [vmem:[%s4089_s15 + $0x380] ss:$16 sps:$4 sm:$0xff]  }
  0xa3   : > { %1962 = vmatpush1.bf16.msra.mxu0 %v3332_v27  ;;  %v3370_v57 = vld [vmem:[%s4089_s15 + $0x1a4] ss:$16 sps:$4 sm:$0xff]   ;;  %v3374_v59 = vld [vmem:[%s4089_s15 + $0x1a0] ss:$16 sps:$4 sm:$0xff]  }
  0xa4   : > { %2003 = vmatpush1.bf16.msra.mxu1 %v3333_v28  ;;  %1963 = vmatprep.subr.bf16.mxu0 %v3334_v29  ;;  %v3372_v58 = vld [vmem:[%s4089_s15 + $0x3a4] ss:$16 sps:$4 sm:$0xff]   ;;  %v3375_v60 = vld [vmem:[%s4089_s15 + $0x3a0] ss:$16 sps:$4 sm:$0xff]  }
  0xa5   : > { %2004 = vmatprep.subr.bf16.mxu1 %v3336_v30  ;;  %v3376_v61 = vld [vmem:[%s4089_s15 + $0x1c4] ss:$16 sps:$4 sm:$0xff]   ;;  %v3380_v63 = vld [vmem:[%s4089_s15 + $0x1c0] ss:$16 sps:$4 sm:$0xff]  }
  0xa6   : > { %v3378_v62 = vld [vmem:[%s4089_s15 + $0x3c4] ss:$16 sps:$4 sm:$0xff]   ;;  %v3381_v0 = vld [vmem:[%s4089_s15 + $0x3c0] ss:$16 sps:$4 sm:$0xff]  }
  0xa7   : > { %1964 = vmatpush1.bf16.msra.mxu0 %v3338_v31  ;;  %v3382_v1 = vld [vmem:[%s4089_s15 + $0x1e4] ss:$16 sps:$4 sm:$0xff]   ;;  %v3386_v3 = vld [vmem:[%s4089_s15 + $0x1e0] ss:$16 sps:$4 sm:$0xff]  }
  0xa8   : > { %2005 = vmatpush1.bf16.msra.mxu1 %v3339_v32  ;;  %1965 = vmatprep.subr.bf16.mxu0 %v3340_v33  ;;  %v3384_v2 = vld [vmem:[%s4089_s15 + $0x3e4] ss:$16 sps:$4 sm:$0xff]   ;;  %v3387_v4 = vld [vmem:[%s4089_s15 + $0x3e0] ss:$16 sps:$4 sm:$0xff]  }
  0xa9   : > { %2006 = vmatprep.subr.bf16.mxu1 %v3342_v34  ;;  %v393_v5 = vld [vmem:[%s4107_s12] sm:$0xff]  ;;  %v395_v6 = vld [vmem:[%s4107_s12 + $0x10] sm:$0xff] }
  0xaa   : > { %v3390_v7 = vld [vmem:[%s4089_s15 + $0x404] ss:$16 sps:$4 sm:$0xff]   ;;  %v4186_v9 = vpack.c.bf16 %v393_v5, %v393_v5  ;;  %v4188_v10 = vpack.c.bf16 %v395_v6, %v395_v6  ;;  %v3388_v11 = vld [vmem:[%s4089_s15 + $0x400] ss:$16 sps:$4 sm:$0xff]  }
  0xab   : > { %1966 = vmatpush1.bf16.msra.mxu0 %v3344_v35  ;;  %v3393_v8 = vld [vmem:[%s4089_s15 + $0x604] ss:$16 sps:$4 sm:$0xff]   ;;  %v3391_v12 = vld [vmem:[%s4089_s15 + $0x600] ss:$16 sps:$4 sm:$0xff]   ;;  %v398_v35 = vld [vmem:[%s4107_s12 + $0x28] sm:$0xff] }
  0xac   : > { %2007 = vmatpush1.bf16.msra.mxu1 %v3345_v36  ;;  %1967 = vmatprep.subr.bf16.mxu0 %v3346_v37  ;;  %v3396_v13 = vld [vmem:[%s4089_s15 + $0x424] ss:$16 sps:$4 sm:$0xff]   ;;  %v3394_v15 = vld [vmem:[%s4089_s15 + $0x420] ss:$16 sps:$4 sm:$0xff]  }
  0xad   : > { %2008 = vmatprep.subr.bf16.mxu1 %v3348_v38  ;;  %v3399_v14 = vld [vmem:[%s4089_s15 + $0x624] ss:$16 sps:$4 sm:$0xff]   ;;  %v3397_v16 = vld [vmem:[%s4089_s15 + $0x620] ss:$16 sps:$4 sm:$0xff]   ;;  %v4219_v38 = vpack.c.bf16 %v398_v35, %v398_v35  ;;  %v3502_v35 = vld [vmem:[%s4089_s15 + $0x68] ss:$16 sps:$4 sm:$0xff]  }
  0xae   : > { %v3402_v17 = vld [vmem:[%s4089_s15 + $0x444] ss:$16 sps:$4 sm:$0xff]   ;;  %v3400_v19 = vld [vmem:[%s4089_s15 + $0x440] ss:$16 sps:$4 sm:$0xff]  }
  0xaf   : > { %1968 = vmatpush1.bf16.msra.mxu0 %v3350_v39  ;;  %v3405_v18 = vld [vmem:[%s4089_s15 + $0x644] ss:$16 sps:$4 sm:$0xff]   ;;  %v3403_v20 = vld [vmem:[%s4089_s15 + $0x640] ss:$16 sps:$4 sm:$0xff]   ;;  %v400_v39 = vld [vmem:[%s4107_s12 + $0x38] sm:$0xff] }
  0xb0   : > { %2009 = vmatpush1.bf16.msra.mxu1 %v3351_v40  ;;  %1969 = vmatprep.subr.bf16.mxu0 %v3352_v41  ;;  %v3408_v21 = vld [vmem:[%s4089_s15 + $0x464] ss:$16 sps:$4 sm:$0xff]   ;;  %v3406_v23 = vld [vmem:[%s4089_s15 + $0x460] ss:$16 sps:$4 sm:$0xff]   ;;  %v4223_v41 = vpack.c.bf16 %v400_v39, %v400_v39  ;;  %v3511_v39 = vld [vmem:[%s4089_s15 + $0x288] ss:$16 sps:$4 sm:$0xff]  }
  0xb1   : > { %2010 = vmatprep.subr.bf16.mxu1 %v3354_v42  ;;  %v3411_v22 = vld [vmem:[%s4089_s15 + $0x664] ss:$16 sps:$4 sm:$0xff]   ;;  %v3409_v24 = vld [vmem:[%s4089_s15 + $0x660] ss:$16 sps:$4 sm:$0xff]  }
  0xb2   : > { %v3414_v25 = vld [vmem:[%s4089_s15 + $0x484] ss:$16 sps:$4 sm:$0xff]   ;;  %v3412_v27 = vld [vmem:[%s4089_s15 + $0x480] ss:$16 sps:$4 sm:$0xff]  }
  0xb3   : > { %1970 = vmatpush1.bf16.msra.mxu0 %v3356_v43  ;;  %v3417_v26 = vld [vmem:[%s4089_s15 + $0x684] ss:$16 sps:$4 sm:$0xff]   ;;  %v3415_v28 = vld [vmem:[%s4089_s15 + $0x680] ss:$16 sps:$4 sm:$0xff]  }
  0xb4   : > { %2011 = vmatpush1.bf16.msra.mxu1 %v3357_v44  ;;  %1971 = vmatprep.subr.bf16.mxu0 %v3358_v45  ;;  %v3420_v29 = vld [vmem:[%s4089_s15 + $0x4a4] ss:$16 sps:$4 sm:$0xff]   ;;  %v3418_v31 = vld [vmem:[%s4089_s15 + $0x4a0] ss:$16 sps:$4 sm:$0xff]  }
  0xb5   : > { %2012 = vmatprep.subr.bf16.mxu1 %v3360_v46  ;;  %v3423_v30 = vld [vmem:[%s4089_s15 + $0x6a4] ss:$16 sps:$4 sm:$0xff]   ;;  %v3421_v32 = vld [vmem:[%s4089_s15 + $0x6a0] ss:$16 sps:$4 sm:$0xff]  }
  0xb6   : > { %v3426_v33 = vld [vmem:[%s4089_s15 + $0x4c4] ss:$16 sps:$4 sm:$0xff]   ;;  %v3424_v36 = vld [vmem:[%s4089_s15 + $0x4c0] ss:$16 sps:$4 sm:$0xff]  }
  0xb7   : > { %1972 = vmatpush1.bf16.msra.mxu0 %v3362_v48  ;;  %v3429_v34 = vld [vmem:[%s4089_s15 + $0x6c4] ss:$16 sps:$4 sm:$0xff]   ;;  %v3427_v37 = vld [vmem:[%s4089_s15 + $0x6c0] ss:$16 sps:$4 sm:$0xff]  }
  0xb8   : > { %2013 = vmatpush1.bf16.msra.mxu1 %v3363_v49  ;;  %1973 = vmatprep.subr.bf16.mxu0 %v3364_v52  ;;  %v3432_v40 = vld [vmem:[%s4089_s15 + $0x4e4] ss:$16 sps:$4 sm:$0xff]   ;;  %v3430_v43 = vld [vmem:[%s4089_s15 + $0x4e0] ss:$16 sps:$4 sm:$0xff]  }
  0xb9   : > { %2014 = vmatprep.subr.bf16.mxu1 %v3366_v54  ;;  %v3435_v42 = vld [vmem:[%s4089_s15 + $0x6e4] ss:$16 sps:$4 sm:$0xff]   ;;  %v3433_v44 = vld [vmem:[%s4089_s15 + $0x6e0] ss:$16 sps:$4 sm:$0xff]  }
  0xba   : > { %v3438_v45 = vld [vmem:[%s4089_s15 + $0x504] ss:$16 sps:$4 sm:$0xff]   ;;  %v3436_v47 = vld [vmem:[%s4089_s15 + $0x500] ss:$16 sps:$4 sm:$0xff]  }
  0xbb   : > { %1974 = vmatpush1.bf16.msra.mxu0 %v3368_v55  ;;  %v3441_v46 = vld [vmem:[%s4089_s15 + $0x704] ss:$16 sps:$4 sm:$0xff]   ;;  %v3439_v48 = vld [vmem:[%s4089_s15 + $0x700] ss:$16 sps:$4 sm:$0xff]  }
  0xbc   : > { %2015 = vmatpush1.bf16.msra.mxu1 %v3369_v56  ;;  %1975 = vmatprep.subr.bf16.mxu0 %v3370_v57  ;;  %v3444_v49 = vld [vmem:[%s4089_s15 + $0x524] ss:$16 sps:$4 sm:$0xff]   ;;  %v3442_v52 = vld [vmem:[%s4089_s15 + $0x520] ss:$16 sps:$4 sm:$0xff]  }
  0xbd   : > { %2016 = vmatprep.subr.bf16.mxu1 %v3372_v58  ;;  %v3447_v51 = vld [vmem:[%s4089_s15 + $0x724] ss:$16 sps:$4 sm:$0xff]   ;;  %v3445_v54 = vld [vmem:[%s4089_s15 + $0x720] ss:$16 sps:$4 sm:$0xff]  }
  0xbe   : > { %v3450_v55 = vld [vmem:[%s4089_s15 + $0x544] ss:$16 sps:$4 sm:$0xff]   ;;  %v3448_v57 = vld [vmem:[%s4089_s15 + $0x540] ss:$16 sps:$4 sm:$0xff]  }
  0xbf   : > { %1976 = vmatpush1.bf16.msra.mxu0 %v3374_v59  ;;  %v3453_v56 = vld [vmem:[%s4089_s15 + $0x744] ss:$16 sps:$4 sm:$0xff]   ;;  %v3451_v58 = vld [vmem:[%s4089_s15 + $0x740] ss:$16 sps:$4 sm:$0xff]  }
  0xc0   : > { %2017 = vmatpush1.bf16.msra.mxu1 %v3375_v60  ;;  %1977 = vmatprep.subr.bf16.mxu0 %v3376_v61  ;;  %v3456_v59 = vld [vmem:[%s4089_s15 + $0x564] ss:$16 sps:$4 sm:$0xff]   ;;  %v3454_v61 = vld [vmem:[%s4089_s15 + $0x560] ss:$16 sps:$4 sm:$0xff]  }
  0xc1   : > { %2018 = vmatprep.subr.bf16.mxu1 %v3378_v62  ;;  %v3459_v60 = vld [vmem:[%s4089_s15 + $0x764] ss:$16 sps:$4 sm:$0xff]   ;;  %v3457_v62 = vld [vmem:[%s4089_s15 + $0x760] ss:$16 sps:$4 sm:$0xff]  }
  0xc2   : > { %v3466_v5 = vld [vmem:[%s4089_s15 + $0x5a0] ss:$16 sps:$4 sm:$0xff]  }
  0xc3   : > { %1978 = vmatpush1.bf16.msra.mxu0 %v3380_v63  ;;  %v3462_v63 = vld [vmem:[%s4089_s15 + $0x584] ss:$16 sps:$4 sm:$0xff]   ;;  %v3469_v6 = vld [vmem:[%s4089_s15 + $0x7a0] ss:$16 sps:$4 sm:$0xff]  }
  0xc4   : > { %2019 = vmatpush1.bf16.msra.mxu1 %v3381_v0  ;;  %1979 = vmatprep.subr.bf16.mxu0 %v3382_v1  ;;  %v3465_v0 = vld [vmem:[%s4089_s15 + $0x784] ss:$16 sps:$4 sm:$0xff]   ;;  %v3460_v1 = vld [vmem:[%s4089_s15 + $0x580] ss:$16 sps:$4 sm:$0xff]  }
  0xc5   : > { %2020 = vmatprep.subr.bf16.mxu1 %v3384_v2  ;;  %v3463_v2 = vld [vmem:[%s4089_s15 + $0x780] ss:$16 sps:$4 sm:$0xff]  }
  0xc7   : > { %1980 = vmatpush1.bf16.msra.mxu0 %v3386_v3  ;;  %v3468_v3 = vld [vmem:[%s4089_s15 + $0x5a4] ss:$16 sps:$4 sm:$0xff]  }
  0xc8   : > { %2021 = vmatpush1.bf16.msra.mxu1 %v3387_v4  ;;  %2031 = vmatprep.subr.bf16.mxu0 %v3390_v7  ;;  %v3471_v4 = vld [vmem:[%s4089_s15 + $0x7a4] ss:$16 sps:$4 sm:$0xff]  }
  0xc9   : > { %2072 = vmatprep.subr.bf16.mxu1 %v3393_v8  ;;  %v3474_v7 = vld [vmem:[%s4089_s15 + $0x5c4] ss:$16 sps:$4 sm:$0xff]  }
  0xca   : > { %1982 = vmatmul.mubr.bf16.vlgmr.msra.gmra.mrb[0].mxu0 %v4186_v9  ;;  %v3477_v8 = vld [vmem:[%s4089_s15 + $0x7c4] ss:$16 sps:$4 sm:$0xff]  }
  0xcb   : > { %2023 = vmatmul.mubr.bf16.vlgmr.msra.gmra.mrb[0].mxu1 %v4188_v10  ;;  %2032 = vmatpush1.bf16.msra.mxu0 %v3388_v11  ;;  %v3472_v11 = vld [vmem:[%s4089_s15 + $0x5c0] ss:$16 sps:$4 sm:$0xff]  }
  0xcc   : > { %2073 = vmatpush1.bf16.msra.mxu1 %v3391_v12  ;;  %2033 = vmatprep.subr.bf16.mxu0 %v3396_v13  ;;  %v3475_v12 = vld [vmem:[%s4089_s15 + $0x7c0] ss:$16 sps:$4 sm:$0xff]   ;;  %v3480_v13 = vld [vmem:[%s4089_s15 + $0x5e4] ss:$16 sps:$4 sm:$0xff]  }
  0xcd   : > { %2074 = vmatprep.subr.bf16.mxu1 %v3399_v14  ;;  %2063 = vmatprep.mubr.bf16.mxu0 %v4219_v38  ;;  %v3483_v14 = vld [vmem:[%s4089_s15 + $0x7e4] ss:$16 sps:$4 sm:$0xff]  }
  0xce   : > { %2104 = vmatprep.mubr.bf16.mxu1 %v4223_v41 }
  0xcf   : > { %2034 = vmatpush1.bf16.msra.mxu0 %v3394_v15  ;;  %v3478_v15 = vld [vmem:[%s4089_s15 + $0x5e0] ss:$16 sps:$4 sm:$0xff]  }
  0xd0   : > { %2075 = vmatpush1.bf16.msra.mxu1 %v3397_v16  ;;  %2035 = vmatprep.subr.bf16.mxu0 %v3402_v17  ;;  %v3481_v16 = vld [vmem:[%s4089_s15 + $0x7e0] ss:$16 sps:$4 sm:$0xff]  }
  0xd1   : > { %2076 = vmatprep.subr.bf16.mxu1 %v3405_v18  ;;  %v397_v17 = vld [vmem:[%s4107_s12 + $0x20] sm:$0xff]  ;;  %v399_v18 = vld [vmem:[%s4107_s12 + $0x30] sm:$0xff] }
  0xd3   : > { %2036 = vmatpush1.bf16.msra.mxu0 %v3400_v19  ;;  %v3486_v19 = vld [vmem:[%s4089_s15 + $0xc] ss:$16 sps:$4 sm:$0xff]  }
  0xd4   : > { %2077 = vmatpush1.bf16.msra.mxu1 %v3403_v20  ;;  %2037 = vmatprep.subr.bf16.mxu0 %v3408_v21  ;;  %v3489_v20 = vld [vmem:[%s4089_s15 + $0x20c] ss:$16 sps:$4 sm:$0xff]   ;;  %v4266_v21 = vpack.c.bf16 %v397_v17, %v397_v17 }
  0xd5   : > { %2078 = vmatprep.subr.bf16.mxu1 %v3411_v22  ;;  %v4268_v22 = vpack.c.bf16 %v399_v18, %v399_v18  ;;  %v3570_v17 = vld [vmem:[%s4089_s15 + $0x1cc] ss:$16 sps:$4 sm:$0xff]  }
  0xd6   : > { %v3573_v18 = vld [vmem:[%s4089_s15 + $0x3cc] ss:$16 sps:$4 sm:$0xff]  }
  0xd7   : > { %2038 = vmatpush1.bf16.msra.mxu0 %v3406_v23  ;;  %v3484_v23 = vld [vmem:[%s4089_s15 + $0x8] ss:$16 sps:$4 sm:$0xff]  }
  0xd8   : > { %2079 = vmatpush1.bf16.msra.mxu1 %v3409_v24  ;;  %2039 = vmatprep.subr.bf16.mxu0 %v3414_v25  ;;  %v3487_v24 = vld [vmem:[%s4089_s15 + $0x208] ss:$16 sps:$4 sm:$0xff]   ;;  %v3492_v25 = vld [vmem:[%s4089_s15 + $0x2c] ss:$16 sps:$4 sm:$0xff]  }
  0xd9   : > { %2080 = vmatprep.subr.bf16.mxu1 %v3417_v26  ;;  %v3495_v26 = vld [vmem:[%s4089_s15 + $0x22c] ss:$16 sps:$4 sm:$0xff]  }
  0xdb   : > { %2040 = vmatpush1.bf16.msra.mxu0 %v3412_v27  ;;  %v3490_v27 = vld [vmem:[%s4089_s15 + $0x28] ss:$16 sps:$4 sm:$0xff]  }
  0xdc   : > { %2081 = vmatpush1.bf16.msra.mxu1 %v3415_v28  ;;  %2041 = vmatprep.subr.bf16.mxu0 %v3420_v29  ;;  %v3493_v28 = vld [vmem:[%s4089_s15 + $0x228] ss:$16 sps:$4 sm:$0xff]   ;;  %v3498_v29 = vld [vmem:[%s4089_s15 + $0x4c] ss:$16 sps:$4 sm:$0xff]  }
  0xdd   : > { %2082 = vmatprep.subr.bf16.mxu1 %v3423_v30  ;;  %v3501_v30 = vld [vmem:[%s4089_s15 + $0x24c] ss:$16 sps:$4 sm:$0xff]  }
  0xdf   : > { %2042 = vmatpush1.bf16.msra.mxu0 %v3418_v31  ;;  %v3496_v31 = vld [vmem:[%s4089_s15 + $0x48] ss:$16 sps:$4 sm:$0xff]  }
  0xe0   : > { %2083 = vmatpush1.bf16.msra.mxu1 %v3421_v32  ;;  %2043 = vmatprep.subr.bf16.mxu0 %v3426_v33  ;;  %v3499_v32 = vld [vmem:[%s4089_s15 + $0x248] ss:$16 sps:$4 sm:$0xff]   ;;  %v3504_v33 = vld [vmem:[%s4089_s15 + $0x6c] ss:$16 sps:$4 sm:$0xff]  }
  0xe1   : > { %2084 = vmatprep.subr.bf16.mxu1 %v3429_v34  ;;  %v3507_v34 = vld [vmem:[%s4089_s15 + $0x26c] ss:$16 sps:$4 sm:$0xff]  }
  0xe3   : > { %2044 = vmatpush1.bf16.msra.mxu0 %v3424_v36  ;;  %v3505_v36 = vld [vmem:[%s4089_s15 + $0x268] ss:$16 sps:$4 sm:$0xff]  }
  0xe4   : > { %2085 = vmatpush1.bf16.msra.mxu1 %v3427_v37  ;;  %2045 = vmatprep.subr.bf16.mxu0 %v3432_v40  ;;  %v3508_v37 = vld [vmem:[%s4089_s15 + $0x88] ss:$16 sps:$4 sm:$0xff]   ;;  %v3516_v40 = vld [vmem:[%s4089_s15 + $0xac] ss:$16 sps:$4 sm:$0xff]  }
  0xe5   : > { %2086 = vmatprep.subr.bf16.mxu1 %v3435_v42  ;;  %v3519_v42 = vld [vmem:[%s4089_s15 + $0x2ac] ss:$16 sps:$4 sm:$0xff]  }
  0xe7   : > { %2046 = vmatpush1.bf16.msra.mxu0 %v3430_v43  ;;  %v3514_v43 = vld [vmem:[%s4089_s15 + $0xa8] ss:$16 sps:$4 sm:$0xff]  }
  0xe8   : > { %2087 = vmatpush1.bf16.msra.mxu1 %v3433_v44  ;;  %2047 = vmatprep.subr.bf16.mxu0 %v3438_v45  ;;  %v3517_v44 = vld [vmem:[%s4089_s15 + $0x2a8] ss:$16 sps:$4 sm:$0xff]   ;;  %v3522_v45 = vld [vmem:[%s4089_s15 + $0xcc] ss:$16 sps:$4 sm:$0xff]  }
  0xe9   : > { %2088 = vmatprep.subr.bf16.mxu1 %v3441_v46  ;;  %v3525_v46 = vld [vmem:[%s4089_s15 + $0x2cc] ss:$16 sps:$4 sm:$0xff]  }
  0xeb   : > { %2048 = vmatpush1.bf16.msra.mxu0 %v3436_v47  ;;  %v3520_v47 = vld [vmem:[%s4089_s15 + $0xc8] ss:$16 sps:$4 sm:$0xff]  }
  0xec   : > { %2089 = vmatpush1.bf16.msra.mxu1 %v3439_v48  ;;  %2049 = vmatprep.subr.bf16.mxu0 %v3444_v49  ;;  %v3523_v48 = vld [vmem:[%s4089_s15 + $0x2c8] ss:$16 sps:$4 sm:$0xff]   ;;  %v3528_v49 = vld [vmem:[%s4089_s15 + $0xec] ss:$16 sps:$4 sm:$0xff]  }
  0xed   : > { %2090 = vmatprep.subr.bf16.mxu1 %v3447_v51  ;;  %v3531_v51 = vld [vmem:[%s4089_s15 + $0x2ec] ss:$16 sps:$4 sm:$0xff]  }
  0xef   : > { %2050 = vmatpush1.bf16.msra.mxu0 %v3442_v52  ;;  %v3526_v52 = vld [vmem:[%s4089_s15 + $0xe8] ss:$16 sps:$4 sm:$0xff]  }
  0xf0   : > { %2091 = vmatpush1.bf16.msra.mxu1 %v3445_v54  ;;  %2051 = vmatprep.subr.bf16.mxu0 %v3450_v55  ;;  %v3529_v54 = vld [vmem:[%s4089_s15 + $0x2e8] ss:$16 sps:$4 sm:$0xff]   ;;  %v3534_v55 = vld [vmem:[%s4089_s15 + $0x10c] ss:$16 sps:$4 sm:$0xff]  }
  0xf1   : > { %2092 = vmatprep.subr.bf16.mxu1 %v3453_v56  ;;  %v3537_v56 = vld [vmem:[%s4089_s15 + $0x30c] ss:$16 sps:$4 sm:$0xff]  }
  0xf3   : > { %2052 = vmatpush1.bf16.msra.mxu0 %v3448_v57  ;;  %v3532_v57 = vld [vmem:[%s4089_s15 + $0x108] ss:$16 sps:$4 sm:$0xff]  }
  0xf4   : > { %2093 = vmatpush1.bf16.msra.mxu1 %v3451_v58  ;;  %2053 = vmatprep.subr.bf16.mxu0 %v3456_v59  ;;  %v3535_v58 = vld [vmem:[%s4089_s15 + $0x308] ss:$16 sps:$4 sm:$0xff]   ;;  %v3540_v59 = vld [vmem:[%s4089_s15 + $0x12c] ss:$16 sps:$4 sm:$0xff]  }
  0xf5   : > { %2094 = vmatprep.subr.bf16.mxu1 %v3459_v60  ;;  %v3543_v60 = vld [vmem:[%s4089_s15 + $0x32c] ss:$16 sps:$4 sm:$0xff]  }
  0xf7   : > { %2054 = vmatpush1.bf16.msra.mxu0 %v3454_v61  ;;  %v3538_v61 = vld [vmem:[%s4089_s15 + $0x128] ss:$16 sps:$4 sm:$0xff]  }
  0xf8   : > { %2095 = vmatpush1.bf16.msra.mxu1 %v3457_v62  ;;  %2055 = vmatprep.subr.bf16.mxu0 %v3462_v63  ;;  %v3541_v62 = vld [vmem:[%s4089_s15 + $0x328] ss:$16 sps:$4 sm:$0xff]   ;;  %v3546_v63 = vld [vmem:[%s4089_s15 + $0x14c] ss:$16 sps:$4 sm:$0xff]  }
  0xf9   : > { %2096 = vmatprep.subr.bf16.mxu1 %v3465_v0  ;;  %v3549_v0 = vld [vmem:[%s4089_s15 + $0x34c] ss:$16 sps:$4 sm:$0xff]  }
  0xfb   : > { %2056 = vmatpush1.bf16.msra.mxu0 %v3460_v1  ;;  %v3544_v1 = vld [vmem:[%s4089_s15 + $0x148] ss:$16 sps:$4 sm:$0xff]  }
  0xfc   : > { %2097 = vmatpush1.bf16.msra.mxu1 %v3463_v2  ;;  %2057 = vmatprep.subr.bf16.mxu0 %v3468_v3  ;;  %v3547_v2 = vld [vmem:[%s4089_s15 + $0x348] ss:$16 sps:$4 sm:$0xff]   ;;  %v3552_v3 = vld [vmem:[%s4089_s15 + $0x16c] ss:$16 sps:$4 sm:$0xff]  }
  0xfd   : > { %2098 = vmatprep.subr.bf16.mxu1 %v3471_v4  ;;  %v3555_v4 = vld [vmem:[%s4089_s15 + $0x36c] ss:$16 sps:$4 sm:$0xff]  }
  0xff   : > { %2058 = vmatpush1.bf16.msra.mxu0 %v3466_v5  ;;  %v3550_v5 = vld [vmem:[%s4089_s15 + $0x168] ss:$16 sps:$4 sm:$0xff]  }
 0x100   : > { %2099 = vmatpush1.bf16.msra.mxu1 %v3469_v6  ;;  %2059 = vmatprep.subr.bf16.mxu0 %v3474_v7  ;;  %v3553_v6 = vld [vmem:[%s4089_s15 + $0x368] ss:$16 sps:$4 sm:$0xff]   ;;  %v3558_v7 = vld [vmem:[%s4089_s15 + $0x18c] ss:$16 sps:$4 sm:$0xff]  }
 0x101   : > { %2100 = vmatprep.subr.bf16.mxu1 %v3477_v8  ;;  %v3561_v8 = vld [vmem:[%s4089_s15 + $0x38c] ss:$16 sps:$4 sm:$0xff]  }
 0x103   : > { %2060 = vmatpush1.bf16.msra.mxu0 %v3472_v11  ;;  %v3556_v11 = vld [vmem:[%s4089_s15 + $0x188] ss:$16 sps:$4 sm:$0xff]  }
 0x104   : > { %2101 = vmatpush1.bf16.msra.mxu1 %v3475_v12  ;;  %2061 = vmatprep.subr.bf16.mxu0 %v3480_v13  ;;  %v3559_v12 = vld [vmem:[%s4089_s15 + $0x388] ss:$16 sps:$4 sm:$0xff]   ;;  %v3564_v13 = vld [vmem:[%s4089_s15 + $0x1ac] ss:$16 sps:$4 sm:$0xff]  }
 0x105   : > { %2102 = vmatprep.subr.bf16.mxu1 %v3483_v14  ;;  %v3567_v14 = vld [vmem:[%s4089_s15 + $0x3ac] ss:$16 sps:$4 sm:$0xff]  }
 0x107   : > { %2062 = vmatpush1.bf16.msra.mxu0 %v3478_v15  ;;  %v3562_v15 = vld [vmem:[%s4089_s15 + $0x1a8] ss:$16 sps:$4 sm:$0xff]  }
 0x108   : > { %2103 = vmatpush1.bf16.msra.mxu1 %v3481_v16  ;;  %2113 = vmatprep.subr.bf16.mxu0 %v3486_v19  ;;  %v3565_v16 = vld [vmem:[%s4089_s15 + $0x3a8] ss:$16 sps:$4 sm:$0xff]  }
 0x109   : > { %2154 = vmatprep.subr.bf16.mxu1 %v3489_v20  ;;  %v3568_v19 = vld [vmem:[%s4089_s15 + $0x1c8] ss:$16 sps:$4 sm:$0xff]  }
 0x10a   : > { %2064 = vmatmul.mubr.bf16.vlgmr.msra.gmra.mrb[4].mxu0 %v4266_v21  ;;  %v3571_v20 = vld [vmem:[%s4089_s15 + $0x3c8] ss:$16 sps:$4 sm:$0xff]  }
 0x10b   : > { %2105 = vmatmul.mubr.bf16.vlgmr.msra.gmra.mrb[4].mxu1 %v4268_v22  ;;  %2114 = vmatpush1.bf16.msra.mxu0 %v3484_v23  ;;  %v3576_v23 = vld [vmem:[%s4089_s15 + $0x1ec] ss:$16 sps:$4 sm:$0xff]  }
 0x10c   : > { %2155 = vmatpush1.bf16.msra.mxu1 %v3487_v24  ;;  %2115 = vmatprep.subr.bf16.mxu0 %v3492_v25  ;;  %v3579_v24 = vld [vmem:[%s4089_s15 + $0x3ec] ss:$16 sps:$4 sm:$0xff]   ;;  %v3574_v25 = vld [vmem:[%s4089_s15 + $0x1e8] ss:$16 sps:$4 sm:$0xff]  }
 0x10d   : > { %2156 = vmatprep.subr.bf16.mxu1 %v3495_v26  ;;  %2145 = vmatprep.mubr.bf16.mxu0 %v4159_v50  ;;  %v3510_v50 = vld [vmem:[%s4089_s15 + $0x8c] ss:$16 sps:$4 sm:$0xff]   ;;  %v3577_v26 = vld [vmem:[%s4089_s15 + $0x3e8] ss:$16 sps:$4 sm:$0xff]  }
 0x10e   : > { %2186 = vmatprep.mubr.bf16.mxu1 %v4163_v53  ;;  %v3513_v53 = vld [vmem:[%s4089_s15 + $0x28c] ss:$16 sps:$4 sm:$0xff]  }
 0x10f   : > { %2116 = vmatpush1.bf16.msra.mxu0 %v3490_v27  ;;  %v3582_v27 = vld [vmem:[%s4089_s15 + $0x40c] ss:$16 sps:$4 sm:$0xff]  }
 0x110   : > { %2157 = vmatpush1.bf16.msra.mxu1 %v3493_v28  ;;  %2117 = vmatprep.subr.bf16.mxu0 %v3498_v29  ;;  %v3585_v28 = vld [vmem:[%s4089_s15 + $0x60c] ss:$16 sps:$4 sm:$0xff]   ;;  %v3580_v29 = vld [vmem:[%s4089_s15 + $0x408] ss:$16 sps:$4 sm:$0xff]  }
 0x111   : > { %2158 = vmatprep.subr.bf16.mxu1 %v3501_v30  ;;  %v3583_v30 = vld [vmem:[%s4089_s15 + $0x608] ss:$16 sps:$4 sm:$0xff]  }
 0x113   : > { %2118 = vmatpush1.bf16.msra.mxu0 %v3496_v31  ;;  %v3588_v31 = vld [vmem:[%s4089_s15 + $0x42c] ss:$16 sps:$4 sm:$0xff]  }
 0x114   : > { %2159 = vmatpush1.bf16.msra.mxu1 %v3499_v32  ;;  %2119 = vmatprep.subr.bf16.mxu0 %v3504_v33  ;;  %v3591_v32 = vld [vmem:[%s4089_s15 + $0x62c] ss:$16 sps:$4 sm:$0xff]   ;;  %v3586_v33 = vld [vmem:[%s4089_s15 + $0x428] ss:$16 sps:$4 sm:$0xff]  }
 0x115   : > { %2160 = vmatprep.subr.bf16.mxu1 %v3507_v34  ;;  %v3589_v34 = vld [vmem:[%s4089_s15 + $0x628] ss:$16 sps:$4 sm:$0xff]  }
 0x117   : > { %2120 = vmatpush1.bf16.msra.mxu0 %v3502_v35  ;;  %v3594_v35 = vld [vmem:[%s4089_s15 + $0x44c] ss:$16 sps:$4 sm:$0xff]  }
 0x118   : > { %2161 = vmatpush1.bf16.msra.mxu1 %v3505_v36  ;;  %2121 = vmatprep.subr.bf16.mxu0 %v3510_v50  ;;  %v3597_v36 = vld [vmem:[%s4089_s15 + $0x64c] ss:$16 sps:$4 sm:$0xff]  }
 0x119   : > { %2162 = vmatprep.subr.bf16.mxu1 %v3513_v53  ;;  %v3600_v50 = vld [vmem:[%s4089_s15 + $0x46c] ss:$16 sps:$4 sm:$0xff]  }
 0x11a   : > { %v3603_v53 = vld [vmem:[%s4089_s15 + $0x66c] ss:$16 sps:$4 sm:$0xff]  }
 0x11b   : > { %2122 = vmatpush1.bf16.msra.mxu0 %v3508_v37  ;;  %v3598_v37 = vld [vmem:[%s4089_s15 + $0x468] ss:$16 sps:$4 sm:$0xff]  }
 0x11c   : > { %2163 = vmatpush1.bf16.msra.mxu1 %v3511_v39  ;;  %2123 = vmatprep.subr.bf16.mxu0 %v3516_v40  ;;  %v3609_v39 = vld [vmem:[%s4089_s15 + $0x68c] ss:$16 sps:$4 sm:$0xff]   ;;  %v3604_v40 = vld [vmem:[%s4089_s15 + $0x488] ss:$16 sps:$4 sm:$0xff]  }
 0x11d   : > { %2164 = vmatprep.subr.bf16.mxu1 %v3519_v42  ;;  %v3607_v42 = vld [vmem:[%s4089_s15 + $0x688] ss:$16 sps:$4 sm:$0xff]  }
 0x11f   : > { %2124 = vmatpush1.bf16.msra.mxu0 %v3514_v43  ;;  %v3612_v43 = vld [vmem:[%s4089_s15 + $0x4ac] ss:$16 sps:$4 sm:$0xff]  }
 0x120   : > { %2165 = vmatpush1.bf16.msra.mxu1 %v3517_v44  ;;  %2125 = vmatprep.subr.bf16.mxu0 %v3522_v45  ;;  %v3615_v44 = vld [vmem:[%s4089_s15 + $0x6ac] ss:$16 sps:$4 sm:$0xff]   ;;  %v3610_v45 = vld [vmem:[%s4089_s15 + $0x4a8] ss:$16 sps:$4 sm:$0xff]  }
 0x121   : > { %2166 = vmatprep.subr.bf16.mxu1 %v3525_v46  ;;  %v3613_v46 = vld [vmem:[%s4089_s15 + $0x6a8] ss:$16 sps:$4 sm:$0xff]  }
 0x123   : > { %2126 = vmatpush1.bf16.msra.mxu0 %v3520_v47  ;;  %v3618_v47 = vld [vmem:[%s4089_s15 + $0x4cc] ss:$16 sps:$4 sm:$0xff]  }
 0x124   : > { %2167 = vmatpush1.bf16.msra.mxu1 %v3523_v48  ;;  %2127 = vmatprep.subr.bf16.mxu0 %v3528_v49  ;;  %v3621_v48 = vld [vmem:[%s4089_s15 + $0x6cc] ss:$16 sps:$4 sm:$0xff]   ;;  %v3616_v49 = vld [vmem:[%s4089_s15 + $0x4c8] ss:$16 sps:$4 sm:$0xff]  }
 0x125   : > { %2168 = vmatprep.subr.bf16.mxu1 %v3531_v51  ;;  %v3619_v51 = vld [vmem:[%s4089_s15 + $0x6c8] ss:$16 sps:$4 sm:$0xff]  }
 0x127   : > { %2128 = vmatpush1.bf16.msra.mxu0 %v3526_v52  ;;  %v3624_v52 = vld [vmem:[%s4089_s15 + $0x4ec] ss:$16 sps:$4 sm:$0xff]  }
 0x128   : > { %2169 = vmatpush1.bf16.msra.mxu1 %v3529_v54  ;;  %2129 = vmatprep.subr.bf16.mxu0 %v3534_v55  ;;  %v3627_v54 = vld [vmem:[%s4089_s15 + $0x6ec] ss:$16 sps:$4 sm:$0xff]   ;;  %v3622_v55 = vld [vmem:[%s4089_s15 + $0x4e8] ss:$16 sps:$4 sm:$0xff]  }
 0x129   : > { %2170 = vmatprep.subr.bf16.mxu1 %v3537_v56  ;;  %v3625_v56 = vld [vmem:[%s4089_s15 + $0x6e8] ss:$16 sps:$4 sm:$0xff]  }
 0x12b   : > { %2130 = vmatpush1.bf16.msra.mxu0 %v3532_v57  ;;  %v3630_v57 = vld [vmem:[%s4089_s15 + $0x50c] ss:$16 sps:$4 sm:$0xff]  }
 0x12c   : > { %2171 = vmatpush1.bf16.msra.mxu1 %v3535_v58  ;;  %2131 = vmatprep.subr.bf16.mxu0 %v3540_v59  ;;  %v3633_v58 = vld [vmem:[%s4089_s15 + $0x70c] ss:$16 sps:$4 sm:$0xff]   ;;  %v3628_v59 = vld [vmem:[%s4089_s15 + $0x508] ss:$16 sps:$4 sm:$0xff]  }
 0x12d   : > { %2172 = vmatprep.subr.bf16.mxu1 %v3543_v60  ;;  %v3631_v60 = vld [vmem:[%s4089_s15 + $0x708] ss:$16 sps:$4 sm:$0xff]  }
 0x12f   : > { %2132 = vmatpush1.bf16.msra.mxu0 %v3538_v61  ;;  %v3636_v61 = vld [vmem:[%s4089_s15 + $0x52c] ss:$16 sps:$4 sm:$0xff]  }
 0x130   : > { %2173 = vmatpush1.bf16.msra.mxu1 %v3541_v62  ;;  %2133 = vmatprep.subr.bf16.mxu0 %v3546_v63  ;;  %v3639_v62 = vld [vmem:[%s4089_s15 + $0x72c] ss:$16 sps:$4 sm:$0xff]   ;;  %v3634_v63 = vld [vmem:[%s4089_s15 + $0x528] ss:$16 sps:$4 sm:$0xff]  }
 0x131   : > { %2174 = vmatprep.subr.bf16.mxu1 %v3549_v0  ;;  %v3637_v0 = vld [vmem:[%s4089_s15 + $0x728] ss:$16 sps:$4 sm:$0xff]  }
 0x133   : > { %2134 = vmatpush1.bf16.msra.mxu0 %v3544_v1  ;;  %v3642_v1 = vld [vmem:[%s4089_s15 + $0x54c] ss:$16 sps:$4 sm:$0xff]  }
 0x134   : > { %2175 = vmatpush1.bf16.msra.mxu1 %v3547_v2  ;;  %2135 = vmatprep.subr.bf16.mxu0 %v3552_v3  ;;  %v3645_v2 = vld [vmem:[%s4089_s15 + $0x74c] ss:$16 sps:$4 sm:$0xff]   ;;  %v3640_v3 = vld [vmem:[%s4089_s15 + $0x548] ss:$16 sps:$4 sm:$0xff]  }
 0x135   : > { %2176 = vmatprep.subr.bf16.mxu1 %v3555_v4  ;;  %v3643_v4 = vld [vmem:[%s4089_s15 + $0x748] ss:$16 sps:$4 sm:$0xff]  }
 0x137   : > { %2136 = vmatpush1.bf16.msra.mxu0 %v3550_v5  ;;  %v3648_v5 = vld [vmem:[%s4089_s15 + $0x56c] ss:$16 sps:$4 sm:$0xff]  }
 0x138   : > { %2177 = vmatpush1.bf16.msra.mxu1 %v3553_v6  ;;  %2137 = vmatprep.subr.bf16.mxu0 %v3558_v7  ;;  %v3651_v6 = vld [vmem:[%s4089_s15 + $0x76c] ss:$16 sps:$4 sm:$0xff]   ;;  %v3646_v7 = vld [vmem:[%s4089_s15 + $0x568] ss:$16 sps:$4 sm:$0xff]  }
 0x139   : > { %2178 = vmatprep.subr.bf16.mxu1 %v3561_v8  ;;  %v3649_v8 = vld [vmem:[%s4089_s15 + $0x768] ss:$16 sps:$4 sm:$0xff]  }
 0x13b   : > { %2138 = vmatpush1.bf16.msra.mxu0 %v3556_v11  ;;  %v3654_v11 = vld [vmem:[%s4089_s15 + $0x58c] ss:$16 sps:$4 sm:$0xff]  }
 0x13c   : > { %2179 = vmatpush1.bf16.msra.mxu1 %v3559_v12  ;;  %2139 = vmatprep.subr.bf16.mxu0 %v3564_v13  ;;  %v3657_v12 = vld [vmem:[%s4089_s15 + $0x78c] ss:$16 sps:$4 sm:$0xff]   ;;  %v3652_v13 = vld [vmem:[%s4089_s15 + $0x588] ss:$16 sps:$4 sm:$0xff]  }
 0x13d   : > { %2180 = vmatprep.subr.bf16.mxu1 %v3567_v14  ;;  %v3655_v14 = vld [vmem:[%s4089_s15 + $0x788] ss:$16 sps:$4 sm:$0xff]  }
 0x13f   : > { %2140 = vmatpush1.bf16.msra.mxu0 %v3562_v15  ;;  %v3660_v15 = vld [vmem:[%s4089_s15 + $0x5ac] ss:$16 sps:$4 sm:$0xff]  }
 0x140   : > { %2181 = vmatpush1.bf16.msra.mxu1 %v3565_v16  ;;  %2141 = vmatprep.subr.bf16.mxu0 %v3570_v17  ;;  %v3663_v16 = vld [vmem:[%s4089_s15 + $0x7ac] ss:$16 sps:$4 sm:$0xff]   ;;  %v3658_v17 = vld [vmem:[%s4089_s15 + $0x5a8] ss:$16 sps:$4 sm:$0xff]  }
 0x141   : > { %2182 = vmatprep.subr.bf16.mxu1 %v3573_v18  ;;  %v3661_v18 = vld [vmem:[%s4089_s15 + $0x7a8] ss:$16 sps:$4 sm:$0xff]  }
 0x143   : > { %2142 = vmatpush1.bf16.msra.mxu0 %v3568_v19  ;;  %v3666_v19 = vld [vmem:[%s4089_s15 + $0x5cc] ss:$16 sps:$4 sm:$0xff]  }
 0x144   : > { %2183 = vmatpush1.bf16.msra.mxu1 %v3571_v20  ;;  %2143 = vmatprep.subr.bf16.mxu0 %v3576_v23  ;;  %v3669_v20 = vld [vmem:[%s4089_s15 + $0x7cc] ss:$16 sps:$4 sm:$0xff]   ;;  %v3664_v23 = vld [vmem:[%s4089_s15 + $0x5c8] ss:$16 sps:$4 sm:$0xff]  }
 0x145   : > { %2184 = vmatprep.subr.bf16.mxu1 %v3579_v24  ;;  %v3667_v24 = vld [vmem:[%s4089_s15 + $0x7c8] ss:$16 sps:$4 sm:$0xff]  }
 0x147   : > { %2144 = vmatpush1.bf16.msra.mxu0 %v3574_v25  ;;  %v3672_v25 = vld [vmem:[%s4089_s15 + $0x5ec] ss:$16 sps:$4 sm:$0xff]  }
 0x148   : > { %2185 = vmatpush1.bf16.msra.mxu1 %v3577_v26  ;;  %2195 = vmatprep.subr.bf16.mxu0 %v3582_v27  ;;  %v3675_v26 = vld [vmem:[%s4089_s15 + $0x7ec] ss:$16 sps:$4 sm:$0xff]   ;;  %v3670_v27 = vld [vmem:[%s4089_s15 + $0x5e8] ss:$16 sps:$4 sm:$0xff]  }
 0x149   : > { %2236 = vmatprep.subr.bf16.mxu1 %v3585_v28  ;;  %v3673_v28 = vld [vmem:[%s4089_s15 + $0x7e8] ss:$16 sps:$4 sm:$0xff]  }
 0x14a   : > { %2146 = vmatmul.mubr.bf16.vlgmr.msra.gmra.mrb[8].mxu0 %v4186_v9  ;;  %v3592_v9 = vld [vmem:[%s4089_s15 + $0x448] ss:$16 sps:$4 sm:$0xff]  }
 0x14b   : > { %2187 = vmatmul.mubr.bf16.vlgmr.msra.gmra.mrb[8].mxu1 %v4188_v10  ;;  %2196 = vmatpush1.bf16.msra.mxu0 %v3580_v29  ;;  %v3595_v10 = vld [vmem:[%s4089_s15 + $0x648] ss:$16 sps:$4 sm:$0xff]  }
 0x14c   : > { %2237 = vmatpush1.bf16.msra.mxu1 %v3583_v30  ;;  %2197 = vmatprep.subr.bf16.mxu0 %v3588_v31 }
 0x14d   : > { %2238 = vmatprep.subr.bf16.mxu1 %v3591_v32  ;;  %2227 = vmatprep.mubr.bf16.mxu0 %v4219_v38  ;;  %v3601_v38 = vld [vmem:[%s4089_s15 + $0x668] ss:$16 sps:$4 sm:$0xff]  }
 0x14e   : > { %2268 = vmatprep.mubr.bf16.mxu1 %v4223_v41  ;;  %v3606_v41 = vld [vmem:[%s4089_s15 + $0x48c] ss:$16 sps:$4 sm:$0xff]  }
 0x14f   : > { %2198 = vmatpush1.bf16.msra.mxu0 %v3586_v33 }
 0x150   : > { %2239 = vmatpush1.bf16.msra.mxu1 %v3589_v34  ;;  %2199 = vmatprep.subr.bf16.mxu0 %v3594_v35 }
 0x151   : > { %2240 = vmatprep.subr.bf16.mxu1 %v3597_v36 }
 0x153   : > { %2200 = vmatpush1.bf16.msra.mxu0 %v3592_v9 }
 0x154   : > { %2241 = vmatpush1.bf16.msra.mxu1 %v3595_v10  ;;  %2201 = vmatprep.subr.bf16.mxu0 %v3600_v50 }
 0x155   : > { %2242 = vmatprep.subr.bf16.mxu1 %v3603_v53 }
 0x157   : > { %2202 = vmatpush1.bf16.msra.mxu0 %v3598_v37 }
 0x158   : > { %2243 = vmatpush1.bf16.msra.mxu1 %v3601_v38  ;;  %2203 = vmatprep.subr.bf16.mxu0 %v3606_v41 }
 0x159   : > { %2244 = vmatprep.subr.bf16.mxu1 %v3609_v39  ;;  %v409_v39 = vld [vmem:[#allocation2] sm:$0xff] }
 0x15b   : > { %2204 = vmatpush1.bf16.msra.mxu0 %v3604_v40 }
 0x15c   : > { %2245 = vmatpush1.bf16.msra.mxu1 %v3607_v42  ;;  %2205 = vmatprep.subr.bf16.mxu0 %v3612_v43  ;;  %v410_v43 = vld [vmem:[#allocation2 + $0x8] sm:$0xff] }
 0x15d   : > { %2246 = vmatprep.subr.bf16.mxu1 %v3615_v44 }
 0x15f   : > { %2206 = vmatpush1.bf16.msra.mxu0 %v3610_v45 }
 0x160   : > { %2247 = vmatpush1.bf16.msra.mxu1 %v3613_v46  ;;  %2207 = vmatprep.subr.bf16.mxu0 %v3618_v47 }
 0x161   : > { %2248 = vmatprep.subr.bf16.mxu1 %v3621_v48 }
 0x163   : > { %2208 = vmatpush1.bf16.msra.mxu0 %v3616_v49 }
 0x164   : > { %2249 = vmatpush1.bf16.msra.mxu1 %v3619_v51  ;;  %2209 = vmatprep.subr.bf16.mxu0 %v3624_v52 }
 0x165   : > { %2250 = vmatprep.subr.bf16.mxu1 %v3627_v54 }
 0x167   : > { %2210 = vmatpush1.bf16.msra.mxu0 %v3622_v55 }
 0x168   : > { %2251 = vmatpush1.bf16.msra.mxu1 %v3625_v56  ;;  %2211 = vmatprep.subr.bf16.mxu0 %v3630_v57 }
 0x169   : > { %2252 = vmatprep.subr.bf16.mxu1 %v3633_v58 }
 0x16b   : > { %2212 = vmatpush1.bf16.msra.mxu0 %v3628_v59 }
 0x16c   : > { %2253 = vmatpush1.bf16.msra.mxu1 %v3631_v60  ;;  %2213 = vmatprep.subr.bf16.mxu0 %v3636_v61 }
 0x16d   : > { %2254 = vmatprep.subr.bf16.mxu1 %v3639_v62 }
 0x16f   : > { %2214 = vmatpush1.bf16.msra.mxu0 %v3634_v63 }
 0x170   : > { %2255 = vmatpush1.bf16.msra.mxu1 %v3637_v0  ;;  %2215 = vmatprep.subr.bf16.mxu0 %v3642_v1 }
 0x171   : > { %2256 = vmatprep.subr.bf16.mxu1 %v3645_v2  ;;  %v411_v2 = vld [vmem:[#allocation2 + $0x10] sm:$0xff] }
 0x173   : > { %2216 = vmatpush1.bf16.msra.mxu0 %v3640_v3 }
 0x174   : > { %2257 = vmatpush1.bf16.msra.mxu1 %v3643_v4  ;;  %2217 = vmatprep.subr.bf16.mxu0 %v3648_v5 }
 0x175   : > { %2258 = vmatprep.subr.bf16.mxu1 %v3651_v6 }
 0x177   : > { %2218 = vmatpush1.bf16.msra.mxu0 %v3646_v7  ;;  %v412_v7 = vld [vmem:[#allocation2 + $0x18] sm:$0xff] }
 0x178   : > { %2259 = vmatpush1.bf16.msra.mxu1 %v3649_v8  ;;  %2219 = vmatprep.subr.bf16.mxu0 %v3654_v11 }
 0x179   : > { %2260 = vmatprep.subr.bf16.mxu1 %v3657_v12 }
 0x17b   : > { %2220 = vmatpush1.bf16.msra.mxu0 %v3652_v13 }
 0x17c   : > { %2261 = vmatpush1.bf16.msra.mxu1 %v3655_v14  ;;  %2221 = vmatprep.subr.bf16.mxu0 %v3660_v15  ;;  %v2339_v15 = vld [vmem:[%s4647_s3 + $0x80] sm:$0xff] (!%p3017_p8) }
 0x17d   : > { %2262 = vmatprep.subr.bf16.mxu1 %v3663_v16  ;;  %v2340_v16 = vld [vmem:[%s4647_s3 + $0x88] sm:$0xff] (!%p3017_p8) }
 0x17f   : > { %2222 = vmatpush1.bf16.msra.mxu0 %v3658_v17  ;;  %v2323_v17 = vld [vmem:[%s4647_s3] sm:$0xff] (!%p3017_p8) }
 0x180   : > { %2263 = vmatpush1.bf16.msra.mxu1 %v3661_v18  ;;  %2223 = vmatprep.subr.bf16.mxu0 %v3666_v19  ;;  %v3124_v18 = vpack.c.bf16 (!%p3017_p8), %v2340_v16, %v2339_v15  ;;  %v2324_v19 = vld [vmem:[%s4647_s3 + $0x8] sm:$0xff] (!%p3017_p8) }
 0x181   : > { %2264 = vmatprep.subr.bf16.mxu1 %v3669_v20  ;;  %v2371_v20 = vld [vmem:[%s4647_s3 + $0x180] sm:$0xff] (!%p3017_p8) }
 0x183   : > { %2224 = vmatpush1.bf16.msra.mxu0 %v3664_v23  ;;  %v2372_v23 = vld [vmem:[%s4647_s3 + $0x188] sm:$0xff] (!%p3017_p8) }
 0x184   : > { %2265 = vmatpush1.bf16.msra.mxu1 %v3667_v24  ;;  %2225 = vmatprep.subr.bf16.mxu0 %v3672_v25  ;;  %v3126_v24 = vpack.c.bf16 (!%p3017_p8), %v2324_v19, %v2323_v17  ;;  %v3156_v25 = vpack.c.bf16 (!%p3017_p8), %v2372_v23, %v2371_v20  ;;  %v2334_v19 = vld [vmem:[%s4647_s3 + $0x58] sm:$0xff] (!%p3017_p8)  ;;  %v2365_v20 = vld [vmem:[%s4647_s3 + $0x150] sm:$0xff] (!%p3017_p8) }
 0x185   : > { %2266 = vmatprep.subr.bf16.mxu1 %v3675_v26  ;;  %v2355_v26 = vld [vmem:[%s4647_s3 + $0x100] sm:$0xff] (!%p3017_p8) }
 0x187   : > { %2226 = vmatpush1.bf16.msra.mxu0 %v3670_v27  ;;  %v2356_v27 = vld [vmem:[%s4647_s3 + $0x108] sm:$0xff] (!%p3017_p8) }
 0x188   : > { %2267 = vmatpush1.bf16.msra.mxu1 %v3673_v28  ;;  %v2341_v28 = vld [vmem:[%s4647_s3 + $0x90] sm:$0xff] (!%p3017_p8)  ;;  %3125 = vmatprep.subr.bf16.mxu0 (!%p3017_p8), %v3124_v18 }
 0x189   : > { %3157 = vmatprep.subr.bf16.mxu1 (!%p3017_p8), %v3156_v25  ;;  %v2333_v18 = vld [vmem:[%s4647_s3 + $0x50] sm:$0xff] (!%p3017_p8)  ;;  %v2351_v25 = vld [vmem:[%s4647_s3 + $0xe0] sm:$0xff] (!%p3017_p8) }
 0x18a   : > { %2228 = vmatmul.mubr.bf16.vlgmr.msra.gmra.mrb[12].mxu0 %v4266_v21 }
 0x18b   : > { %2269 = vmatmul.mubr.bf16.vlgmr.msra.gmra.mrb[12].mxu1 %v4268_v22  ;;  %3127 = vmatpush3.bf16.msra.mxu0 (!%p3017_p8), %v3126_v24  ;;  %v2366_v24 = vld [vmem:[%s4647_s3 + $0x158] sm:$0xff] (!%p3017_p8) }
 0x19d   : > { %v1983_v29 = vpop.f32.mrb[0].mxu0 }
 0x19e   : > { %v2024_v30 = vpop.f32.mrb[0].mxu1  ;;  %v1985_v32 = vpop.f32.mrb[1].mxu0 }
 0x19f   : > { %v2025_v31 = vadd.f32 %v2024_v30, %v1983_v29  ;;  %v2026_v33 = vpop.f32.mrb[1].mxu1  ;;  %v1987_v35 = vpop.f32.mrb[2].mxu0  ;;  %v3158_v29 = vpack.c.bf16 (!%p3017_p8), %v2356_v27, %v2355_v26  ;;  %v2342_v30 = vld [vmem:[%s4647_s3 + $0x98] sm:$0xff] (!%p3017_p8)  ;;  %v2352_v26 = vld [vmem:[%s4647_s3 + $0xe8] sm:$0xff] (!%p3017_p8) }
 0x1a0   : > { %v2027_v34 = vadd.f32 %v2026_v33, %v1985_v32  ;;  %v2028_v36 = vpop.f32.mrb[2].mxu1  ;;  %v1988_v9 = vpop.f32.mrb[3].mxu0  ;;  %v2326_v32 = vld [vmem:[%s4647_s3 + $0x18] sm:$0xff] (!%p3017_p8)  ;;  %v3128_v33 = vpack.c.bf16 (!%p3017_p8), %v2342_v30, %v2341_v28  ;;  %v2373_v35 = vld [vmem:[%s4647_s3 + $0x190] sm:$0xff] (!%p3017_p8)  ;;  %v2384_v30 = vld [vmem:[%s4647_s3 + $0x1e8] sm:$0xff] (!%p3017_p8) }
 0x1a1   : > { %v2029_v10 = vpop.f32.mrb[3].mxu1  ;;  %v2374_v36 = vld [vmem:[%s4647_s3 + $0x198] sm:$0xff] (!%p3017_p8)  ;;  %v2357_v9 = vld [vmem:[%s4647_s3 + $0x110] sm:$0xff] (!%p3017_p8)  ;;  %3159 = vmatpush3.bf16.msra.mxu1 (!%p3017_p8), %v3158_v29  ;;  %v2383_v29 = vld [vmem:[%s4647_s3 + $0x1e0] sm:$0xff] (!%p3017_p8) }
 0x1a2   : > { %v3160_v10 = vpack.c.bf16 (!%p3017_p8), %v2374_v36, %v2373_v35  ;;  %3129 = vmatprep.subr.bf16.mxu0 (!%p3017_p8), %v3128_v33  ;;  %v2335_v33 = vld [vmem:[%s4647_s3 + $0x60] sm:$0xff] (!%p3017_p8) }
 0x1a3   : > { %v2367_v35 = vld [vmem:[%s4647_s3 + $0x160] sm:$0xff] (!%p3017_p8) }
 0x1a4   : > { %3161 = vmatprep.subr.bf16.mxu1 (!%p3017_p8), %v3160_v10  ;;  %v3148_v10 = vpack.c.bf16 (!%p3017_p8), %v2352_v26, %v2351_v25 }
 0x1dd   : > { %v2065_v50 = vpop.f32.mrb[4].mxu0 }
 0x1de   : > { %v2106_v53 = vpop.f32.mrb[4].mxu1  ;;  %v2066_v37 = vadd.f32 %v2065_v50, %v2025_v31  ;;  %v2067_v38 = vpop.f32.mrb[5].mxu0  ;;  %v2325_v31 = vld [vmem:[%s4647_s3 + $0x10] sm:$0xff] (!%p3017_p8)  ;;  %v2358_v50 = vld [vmem:[%s4647_s3 + $0x118] sm:$0xff] (!%p3017_p8) }
 0x1df   : > { %v2108_v41 = vpop.f32.mrb[5].mxu1  ;;  %v2068_v40 = vadd.f32 %v2067_v38, %v2027_v34  ;;  %v2069_v21 = vpop.f32.mrb[6].mxu0  ;;  %v3130_v34 = vpack.c.bf16 (!%p3017_p8), %v2326_v32, %v2325_v31  ;;  %v3162_v38 = vpack.c.bf16 (!%p3017_p8), %v2358_v50, %v2357_v9  ;;  %v3146_v32 = vpack.c.bf16 (!%p3017_p8), %v2334_v19, %v2333_v18  ;;  %v2368_v50 = vld [vmem:[%s4647_s3 + $0x168] sm:$0xff] (!%p3017_p8) }
 0x1e0   : > { %v2110_v42 = vpop.f32.mrb[6].mxu1  ;;  %v2107_v22 = vadd.f32 %v2106_v53, %v2066_v37  ;;  %v2070_v44 = vpop.f32.mrb[7].mxu0  ;;  %v2343_v53 = vld [vmem:[%s4647_s3 + $0xa0] sm:$0xff] (!%p3017_p8)  ;;  %v2344_v37 = vld [vmem:[%s4647_s3 + $0xa8] sm:$0xff] (!%p3017_p8)  ;;  %v3178_v9 = vpack.c.bf16 (!%p3017_p8), %v2366_v24, %v2365_v20  ;;  %v3859_v19 = vmov (!%p3017_p8), 0.0  }
 0x1e1   : > { %v2111_v45 = vpop.f32.mrb[7].mxu1  ;;  %v2109_v46 = vadd.f32 %v2108_v41, %v2068_v40  ;;  %v3132_v41 = vpack.c.bf16 (!%p3017_p8), %v2344_v37, %v2343_v53  ;;  %v2328_v40 = vld [vmem:[%s4647_s3 + $0x28] sm:$0xff] (!%p3017_p8)  ;;  %v2375_v21 = vld [vmem:[%s4647_s3 + $0x1a0] sm:$0xff] (!%p3017_p8)  ;;  %3131 = vmatpush3.bf16.msra.mxu0 (!%p3017_p8), %v3130_v34  ;;  %3163 = vmatpush3.bf16.msra.mxu1 (!%p3017_p8), %v3162_v38  ;;  %v3180_v38 = vpack.c.bf16 (!%p3017_p8), %v2384_v30, %v2383_v29 }
 0x1e2   : > { %v2277_v47 = vadd.f32 %v2107_v22, %v409_v39  ;;  %v2327_v39 = vld [vmem:[%s4647_s3 + $0x20] sm:$0xff] (!%p3017_p8)  ;;  %v2376_v42 = vld [vmem:[%s4647_s3 + $0x1a8] sm:$0xff] (!%p3017_p8) }
 0x1e3   : > { %v2278_v48 = vadd.f32 %v2109_v46, %v410_v43  ;;  %v2359_v22 = vld [vmem:[%s4647_s3 + $0x120] sm:$0xff] (!%p3017_p8)  ;;  %v2360_v43 = vld [vmem:[%s4647_s3 + $0x128] sm:$0xff] (!%p3017_p8)  ;;  %v3134_v44 = vpack.c.bf16 (!%p3017_p8), %v2328_v40, %v2327_v39  ;;  %v3164_v45 = vpack.c.bf16 (!%p3017_p8), %v2376_v42, %v2375_v21  ;;  %v2345_v46 = vld [vmem:[%s4647_s3 + $0xb0] sm:$0xff] (!%p3017_p8)  ;;  %3133 = vmatprep.subr.bf16.mxu0 (!%p3017_p8), %v3132_v41 }
 0x1e4   : > { %2281 = vst [vmem:[#allocation2] sm:$0xff] %v2277_v47  ;;  %v2346_v47 = vld [vmem:[%s4647_s3 + $0xb8] sm:$0xff] (!%p3017_p8)  ;;  %v2336_v34 = vld [vmem:[%s4647_s3 + $0x68] sm:$0xff] (!%p3017_p8)  ;;  %v2293_v37 = vld [vmem:[#allocation5] sm:$0xf] (!%p3017_p8) }
 0x1e5   : > { %2282 = vst [vmem:[#allocation2 + $0x8] sm:$0xff] %v2278_v48  ;;  %v2329_v48 = vld [vmem:[%s4647_s3 + $0x30] sm:$0xff] (!%p3017_p8)  ;;  %3165 = vmatprep.subr.bf16.mxu1 (!%p3017_p8), %v3164_v45  ;;  %3135 = vmatpush3.bf16.msra.mxu0 (!%p3017_p8), %v3134_v44  ;;  %v2354_v39 = vld [vmem:[%s4647_s3 + $0xf8] sm:$0xff] (!%p3017_p8)  ;;  %v3150_v45 = vpack.c.bf16 (!%p3017_p8), %v2336_v34, %v2335_v33 }
 0x1e6   : > { %v2353_v41 = vld [vmem:[%s4647_s3 + $0xf0] sm:$0xff] (!%p3017_p8) }
 0x1ec   : > { %v2290_v53 = vld [vmem:[#allocation2 + $0x8] sm:$0xff] (!%p3017_p8) }
 0x21d   : > { %v2147_v49 = vpop.f32.mrb[8].mxu0 }
 0x21e   : > { %v2188_v51 = vpop.f32.mrb[8].mxu1  ;;  %v2149_v54 = vpop.f32.mrb[9].mxu0 }
 0x21f   : > { %v2189_v52 = vadd.f32 %v2188_v51, %v2147_v49  ;;  %v2190_v55 = vpop.f32.mrb[9].mxu1  ;;  %v2151_v57 = vpop.f32.mrb[10].mxu0  ;;  %v3166_v49 = vpack.c.bf16 (!%p3017_p8), %v2360_v43, %v2359_v22  ;;  %v3136_v51 = vpack.c.bf16 (!%p3017_p8), %v2346_v47, %v2345_v46  ;;  %v2385_v22 = vld [vmem:[%s4647_s3 + $0x1f0] sm:$0xff] (!%p3017_p8)  ;;  %v2386_v43 = vld [vmem:[%s4647_s3 + $0x1f8] sm:$0xff] (!%p3017_p8)  ;;  %v2289_v47 = vld [vmem:[#allocation2] sm:$0xff] (!%p3017_p8) }
 0x220   : > { %v2191_v56 = vadd.f32 %v2190_v55, %v2149_v54  ;;  %v2192_v58 = vpop.f32.mrb[10].mxu1  ;;  %v2152_v59 = vpop.f32.mrb[11].mxu0  ;;  %v2377_v54 = vld [vmem:[%s4647_s3 + $0x1b0] sm:$0xff] (!%p3017_p8)  ;;  %v2378_v55 = vld [vmem:[%s4647_s3 + $0x1b8] sm:$0xff] (!%p3017_p8) }
 0x221   : > { %v2193_v60 = vpop.f32.mrb[11].mxu1  ;;  %v2361_v57 = vld [vmem:[%s4647_s3 + $0x130] sm:$0xff] (!%p3017_p8)  ;;  %v2362_v58 = vld [vmem:[%s4647_s3 + $0x138] sm:$0xff] (!%p3017_p8)  ;;  %v2347_v59 = vld [vmem:[%s4647_s3 + $0xc0] sm:$0xff] (!%p3017_p8)  ;;  %3167 = vmatpush3.bf16.msra.mxu1 (!%p3017_p8), %v3166_v49  ;;  %3137 = vmatprep.subr.bf16.mxu0 (!%p3017_p8), %v3136_v51  ;;  %v3182_v51 = vpack.c.bf16 (!%p3017_p8), %v2368_v50, %v2367_v35 }
 0x222   : > { %v2295_v60 = vlaneseq (!%p3017_p8) }
 0x25d   : > { %v2229_v61 = vpop.f32.mrb[12].mxu0 }
 0x25e   : > { %v2270_v62 = vpop.f32.mrb[12].mxu1  ;;  %v2230_v63 = vadd.f32 %v2229_v61, %v2189_v52  ;;  %v2231_v0 = vpop.f32.mrb[13].mxu0  ;;  %v2330_v52 = vld [vmem:[%s4647_s3 + $0x38] sm:$0xff] (!%p3017_p8)  ;;  %v2348_v61 = vld [vmem:[%s4647_s3 + $0xc8] sm:$0xff] (!%p3017_p8) }
 0x25f   : > { %v2272_v1 = vpop.f32.mrb[13].mxu1  ;;  %v2232_v3 = vadd.f32 %v2231_v0, %v2191_v56  ;;  %v2233_v4 = vpop.f32.mrb[14].mxu0  ;;  %2288 = sbr.rel (%p3017_p8) target bundleno = 1065 (0x429), region = 72  ;;  %v3168_v56 = vpack.c.bf16 (!%p3017_p8), %v2378_v55, %v2377_v54  ;;  %v2380_v0 = vld [vmem:[%s4647_s3 + $0x1c8] sm:$0xff] (!%p3017_p8)  ;;  %v2337_v54 = vld [vmem:[%s4647_s3 + $0x70] sm:$0xff] (!%p3017_p8)  ;;  %v2338_v55 = vld [vmem:[%s4647_s3 + $0x78] sm:$0xff] (!%p3017_p8) }
 0x260   : > { %v2274_v5 = vpop.f32.mrb[14].mxu1  ;;  %v2271_v6 = vadd.f32 %v2270_v62, %v2230_v63  ;;  %v2234_v8 = vpop.f32.mrb[15].mxu0  ;;  %v3138_v62 = vpack.c.bf16 (!%p3017_p8), %v2330_v52, %v2329_v48  ;;  %v2379_v63 = vld [vmem:[%s4647_s3 + $0x1c0] sm:$0xff] (!%p3017_p8)  ;;  %v2332_v4 = vld [vmem:[%s4647_s3 + $0x48] sm:$0xff] (!%p3017_p8)  ;;  %v3152_v52 = vpack.c.bf16 (!%p3017_p8), %v2354_v39, %v2353_v41 }
 0x261   : > { %v2275_v11 = vpop.f32.mrb[15].mxu1  ;;  %v2273_v12 = vadd.f32 %v2272_v1, %v2232_v3  ;;  %v3170_v1 = vpack.c.bf16 (!%p3017_p8), %v2362_v58, %v2361_v57  ;;  %v2331_v3 = vld [vmem:[%s4647_s3 + $0x40] sm:$0xff] (!%p3017_p8)  ;;  %3169 = vmatprep.subr.bf16.mxu1 (!%p3017_p8), %v3168_v56  ;;  %v2349_v8 = vld [vmem:[%s4647_s3 + $0xd0] sm:$0xff] (!%p3017_p8)  ;;  %v3184_v57 = vpack.c.bf16 (!%p3017_p8), %v2386_v43, %v2385_v22 }
 0x262   : > { %v2279_v13 = vadd.f32 %v2271_v6, %v411_v2  ;;  %v3140_v2 = vpack.c.bf16 (!%p3017_p8), %v2348_v61, %v2347_v59  ;;  %v2363_v5 = vld [vmem:[%s4647_s3 + $0x140] sm:$0xff] (!%p3017_p8)  ;;  %v3172_v6 = vpack.c.bf16 (!%p3017_p8), %v2380_v0, %v2379_v63  ;;  %v2350_v11 = vld [vmem:[%s4647_s3 + $0xd8] sm:$0xff] (!%p3017_p8)  ;;  %3139 = vmatpush3.bf16.msra.mxu0 (!%p3017_p8), %v3138_v62  ;;  %v3142_v15 = vpack.c.bf16 (!%p3017_p8), %v2332_v4, %v2331_v3  ;;  %v2369_v58 = vld [vmem:[%s4647_s3 + $0x170] sm:$0xff] (!%p3017_p8) }
 0x263   : > { %v2280_v14 = vadd.f32 %v2273_v12, %v412_v7  ;;  %v2364_v7 = vld [vmem:[%s4647_s3 + $0x148] sm:$0xff] (!%p3017_p8)  ;;  %v2296_v12 = vshrl.u32 (!%p3017_p8), %v2295_v60, 7  ;;  %3171 = vmatpush3.bf16.msra.mxu1 (!%p3017_p8), %v3170_v1  ;;  %v3144_v17 = vpack.c.bf16 (!%p3017_p8), %v2350_v11, %v2349_v8  ;;  %v2370_v59 = vld [vmem:[%s4647_s3 + $0x178] sm:$0xff] (!%p3017_p8)  ;;  %v3154_v63 = vpack.c.bf16 (!%p3017_p8), %v2338_v55, %v2337_v54  ;;  %v2537_v8 = vld [vmem:[%s4649_s5 + $0x10] sm:$0xff] (!%p3017_p8) }
 0x264   : > { %2283 = vst [vmem:[#allocation2 + $0x10] sm:$0xff] %v2279_v13  ;;  %v2381_v13 = vld [vmem:[%s4647_s3 + $0x1d0] sm:$0xff] (!%p3017_p8)  ;;  %3141 = vmatprep.subr.bf16.mxu0 (!%p3017_p8), %v3140_v2  ;;  %v3174_v16 = vpack.c.bf16 (!%p3017_p8), %v2364_v7, %v2363_v5  ;;  %3173 = vmatprep.subr.bf16.mxu1 (!%p3017_p8), %v3172_v6  ;;  %v3186_v1 = vpack.c.bf16 (!%p3017_p8), %v2370_v59, %v2369_v58  ;;  %v2535_v2 = vld [vmem:[%s4649_s5] sm:$0xff] (!%p3017_p8)  ;;  %v2536_v3 = vld [vmem:[%s4649_s5 + $0x8] sm:$0xff] (!%p3017_p8)  ;;  %v3857_v7 = vmov (!%p3017_p8), 0.0|0.0  }
 0x265   : > { %2284 = vst [vmem:[#allocation2 + $0x18] sm:$0xff] %v2280_v14  ;;  %v2382_v14 = vld [vmem:[%s4647_s3 + $0x1d8] sm:$0xff] (!%p3017_p8)  ;;  %v2301_v27 = vsub.s32 (!%p3017_p8), 1, %v2296_v12  ;;  %v2309_v28 = vsub.s32 (!%p3017_p8), 3, %v2296_v12  ;;  %v2297_v31 = vsub.s32 (!%p3017_p8), 0, %v2296_v12  ;;  %v2305_v36 = vsub.s32 (!%p3017_p8), 2, %v2296_v12 }
 0x266   : > { %v3176_v23 = vpack.c.bf16 %v2382_v14, %v2381_v13  ;;  %3143 = vmatpush3.bf16.msra.mxu0 %v3142_v15  ;;  %v3189_v6 = vpack.c.bf16 %v2536_v3, %v2535_v2  ;;  %v2538_v11 = vld [vmem:[%s4649_s5 + $0x18] sm:$0xff]  ;;  %v2539_v13 = vld [vmem:[%s4649_s5 + $0x20] sm:$0xff]  ;;  %v2540_v14 = vld [vmem:[%s4649_s5 + $0x28] sm:$0xff] }
 0x267   : > { %3175 = vmatpush3.bf16.msra.mxu1 %v3174_v16  ;;  %3145 = vmatprep.subr.bf16.mxu0 %v3144_v17  ;;  %v2302_v40 = vrot.slane %v2293_v37, %v2301_v27  ;;  %v2310_v42 = vrot.slane %v2293_v37, %v2309_v28  ;;  %v2298_v44 = vrot.slane %v2293_v37, %v2297_v31  ;;  %v2541_v16 = vld [vmem:[%s4649_s5 + $0x30] sm:$0xff]  ;;  %v2542_v17 = vld [vmem:[%s4649_s5 + $0x38] sm:$0xff] }
 0x268   : > { %3177 = vmatprep.subr.bf16.mxu1 %v3176_v23  ;;  %v2306_v49 = vrot.slane %v2293_v37, %v2305_v36  ;;  %v3192_v12 = vpack.c.bf16 %v2538_v11, %v2537_v8  ;;  %v3195_v15 = vpack.c.bf16 %v2540_v14, %v2539_v13  ;;  %v3198_v18 = vpack.c.bf16 %v2542_v17, %v2541_v16  ;;  %v3018_v23 = vld [vmem:[#allocation7] ss:$0 sm:$0xff] }
 0x269   : > { %v2316_v46 = vadd.f32 %v2302_v40, %v2290_v53  ;;  %v2315_v62 = vadd.f32 %v2298_v44, %v2289_v47 }
 0x26a   : > { %3147 = vmatpush3.bf16.msra.mxu0 %v3146_v32  ;;  %v3019_v32 = vld [vmem:[#allocation8] ss:$0 sm:$0xff] }
 0x26b   : > { %3179 = vmatpush3.bf16.msra.mxu1 %v3178_v9  ;;  %3149 = vmatprep.subr.bf16.mxu0 %v3148_v10  ;;  %v2291_v56 = vld [vmem:[#allocation2 + $0x10] sm:$0xff]  ;;  %v2320_v60 = vmax.f32 %v2316_v46, 0.0  ;;  %v2319_v4 = vmax.f32 %v2315_v62, 0.0 }
 0x26c   : > { %v2292_v21 = vld [vmem:[#allocation2 + $0x18] sm:$0xff]  ;;  %3181 = vmatprep.subr.bf16.mxu1 %v3180_v38  ;;  %v2317_v0 = vadd.f32 %v2306_v49, %v2291_v56 }
 0x26d   : > { %v2318_v48 = vadd.f32 %v2310_v42, %v2292_v21  ;;  %2458 = vmatprep.mubr.f32.mxu0 %v2320_v60 }
 0x26e   : > { %3151 = vmatpush3.bf16.msra.mxu0 %v3150_v45  ;;  %v2321_v5 = vmax.f32 %v2317_v0, 0.0 }
 0x26f   : > { %v2322_v61 = vmax.f32 %v2318_v48, 0.0  ;;  %3183 = vmatpush3.bf16.msra.mxu1 %v3182_v51  ;;  %3153 = vmatprep.subr.bf16.mxu0 %v3152_v52 }
 0x270   : > { %3185 = vmatprep.subr.bf16.mxu1 %v3184_v57 }
 0x271   : > { %2528 = vmatprep.mubr.f32.mxu1 %v2322_v61 }
 0x272   : > { %3155 = vmatpush3.bf16.msra.mxu0 %v3154_v63 }
 0x273   : > { %3187 = vmatpush3.bf16.msra.mxu1 %v3186_v1  ;;  %3188 = vmatprep.subr.bf16.mxu0 %v3857_v7 }
 0x275   : > { %2459 = vmatmul.mubr.f32.vlgmr.msra.gmra.mrb[0].mxu0 %v2319_v4 }
 0x276   : > { %2529 = vmatmul.mubr.f32.vlgmr.msra.gmra.mrb[0].mxu1 %v2321_v5  ;;  %3190 = vmatpush3.bf16.msra.mxu0 %v3189_v6 }
 0x277   : > { %3191 = vmatprep.subr.bf16.mxu0 %v3857_v7  ;;  %3121 = vmatprep.mubr.msk.f32.mxu0 %vm3858_vm0, %v3859_v19 }
 0x27a   : > { %3193 = vmatpush3.bf16.msra.mxu0 %v3192_v12 }
 0x27b   : > { %3194 = vmatprep.subr.bf16.mxu0 %v3857_v7 }
 0x27e   : > { %3196 = vmatpush3.bf16.msra.mxu0 %v3195_v15 }
 0x27f   : > { %3197 = vmatprep.subr.bf16.mxu0 %v3857_v7 }
 0x282   : > { %3199 = vmatpush3.bf16.msra.mxu0 %v3198_v18 }
 0x348   : > { %v3058_v20 = vpop.f32.mrb[0].mxu0 }
 0x349   : > { %v3059_v24 = vpop.f32.mrb[1].mxu0  ;;  %v3093_v25 = vpop.f32.mrb[0].mxu1 }
 0x34a   : > { %v3060_v26 = vadd.f32 %v3059_v24, %v3058_v20  ;;  %v3094_v27 = vpop.f32.mrb[1].mxu1 }
 0x34b   : > { %v3095_v28 = vadd.f32 %v3094_v27, %v3093_v25 }
 0x34c   : > { %v2461_v29 = vadd.f32 %v3060_v26, %v3018_v23 }
 0x34e   : > { %v2531_v30 = vadd.f32 %v3095_v28, %v2461_v29 }
 0x350   : > { %v2534_v31 = vmax.f32 %v2531_v30, 0.0 }
 0x352   : > { %3122 = vmatmul.mubr.msk.f32.vlgmr.msra.gmra.mrb[2].mxu0 %vm2550_vm1, %v2534_v31 }
 0x425   : > { %v2620_v33 = vpop.f32.mrb[2].mxu0 }
 0x426   : > { %v2621_v34 = vadd.f32 %v3019_v32, %v2620_v33  ;;  %v3123_v35 = vpop.f32.mrb[3].mxu0 }
 0x428   : > { %2625 = vst.msk [vmem:[%s4651_s7] sm:$0xff] %vm2624_vm2, %v2621_v34 }
 0x429 PF: > { %s22_s29 = sadd.s32 1, %s3848_s29   ;;  %s4665_s24 = smov %s3832_s25 }
 0x42a   : > { %p19_p10 = scmp.ge.s32.totalorder %s22_s29, 6   ;;  %s4666_s25 = smov %s3836_s26 }
 0x42b   : > { %s4667_s26 = smov %s4043_s17  ;;  %s4668_s27 = smov %s3844_s28 }
 0x42c   : > { %s4669_s28 = smov %s4671_s16  ;;  %21 = sbr.rel (!%p19_p10) target bundleno = 6 (0x6), region = 111 }
 0x433   :  { %2645 = vsyncpa [#allocation4], 1 }
 0x434   :  { %2647 = vsyncpa [#allocation4 + $0x1], 1 }
 0x435   :  { %2648 = vsyncpa [#allocation6], 1 }
 0x436   :  { %2649 = vsyncpa [#allocation9], 1 }

</bundles_post_ra>
